<compile_context>
chip_gen: v7x
topology: tpu7x:2x2x1
jax: 0.10.0
libtpu: 0.0.40
codegen_flags: <defaults>
</compile_context>

<pallas_src>
import jax
import jax.numpy as jnp
from jax.experimental import pallas as pl
from jax.experimental.pallas import tpu as pltpu


# --------------------------------------------------------------------------
# Kernel
# --------------------------------------------------------------------------
def _make_mlp_kernel(bf16_elementwise):
    """Fused 4-layer MLP kernel. bf16_elementwise selects the dtype used for
    bias-add / ReLU between layers (bf16 on v6e/v7x, f32 on v5e)."""
    act_dt = jnp.bfloat16 if bf16_elementwise else jnp.float32

    def kernel(x_ref,
               w1_ref, b1_ref,
               w2_ref, b2_ref,
               w3_ref, b3_ref,
               w4_ref, b4_ref,
               o_ref):
        mxu_dt = w1_ref.dtype  # bfloat16 operands for the MXU

        h = x_ref[...].astype(mxu_dt)

        # Layers 1-3: MXU matmul (f32 accumulation) + bias + ReLU.
        for w_ref, b_ref in ((w1_ref, b1_ref),
                             (w2_ref, b2_ref),
                             (w3_ref, b3_ref)):
            acc = jnp.dot(h, w_ref[...], preferred_element_type=jnp.float32)
            a = acc.astype(act_dt) + b_ref[...]
            h = jnp.maximum(a, 0.0).astype(mxu_dt)

        # Final layer: f32 accumulation + f32 bias, cast to output dtype.
        acc = jnp.dot(h, w4_ref[...], preferred_element_type=jnp.float32)
        o_ref[...] = (acc + b4_ref[...]).astype(o_ref.dtype)

    return kernel


# --------------------------------------------------------------------------
# Hardware detection (best effort, with safe fallbacks)
# --------------------------------------------------------------------------
def _tpu_topology_info():
    """Returns (num_tensorcores_per_chip, vmem_capacity_bytes, bf16_vpu)."""
    kind = ""
    try:
        kind = jax.devices()[0].device_kind.lower()
    except Exception:  # pragma: no cover - CPU/interpret fallback
        pass

    # TensorCores per chip (megacore-style grid sharding only pays off there).
    two_tc = ("v7" in kind) or ("v4" in kind) or ("v5p" in kind)
    num_tc = 2 if two_tc else 1

    # Physical VMEM per TensorCore.
    if "v7" in kind:
        vmem = 64 << 20
    elif kind:
        vmem = 128 << 20
    else:
        vmem = 64 << 20  # conservative default
    try:
        vmem = int(pltpu.get_tpu_info().vmem_capacity_bytes)
    except Exception:
        pass

    # bf16 VPU (elementwise) exists on v6e/v7x, not on v5e.
    bf16_vpu = ("v6" in kind) or ("v7" in kind)
    return num_tc, vmem, bf16_vpu


# --------------------------------------------------------------------------
# Tile picking
# --------------------------------------------------------------------------
def _round_up(v, m):
    return ((v + m - 1) // m) * m


def _pick_batch_tile(B, batch_tile, num_tc):
    """Batch tile: as large as possible (<= batch_tile), balanced across grid
    steps, 128-aligned when feasible, and (on 2-TC parts only) split into an
    even number of steps so both TensorCores get equal work."""
    tb_max = max(8, min(batch_tile, B))
    n_steps = -(-B // tb_max)  # ceil

    if num_tc >= 2 and B >= 256:
        # Give each TensorCore at least one (balanced) step.
        n_steps = max(n_steps, 2)
        if n_steps % 2:
            n_steps += 1

    tb = -(-B // n_steps)
    if tb >= B:
        return B  # single full tile: always a legal block shape.

    if tb >= 128:
        tb_128 = _round_up(tb, 128)
        # Keep 128-alignment only if it preserves the intended step count
        # (otherwise it would re-introduce a near-empty trailing tile).
        if -(-B // tb_128) == n_steps:
            tb = tb_128
        else:
            tb = _round_up(tb, 8)
    else:
        tb = _round_up(tb, 8)  # (8, 128) sublane constraint
    return min(tb, B)


# --------------------------------------------------------------------------
# Wrapper
# --------------------------------------------------------------------------
def vector_mapper_forward(x, params, mode=0, *, batch_tile=2048):
    """Pallas implementation of VectorMapper.forward(x, mode).

    x: (B, D) float32.
    params: dict with w1..w4 of shape (in, out) and b1..b4 of shape (1, out)
            or (out,).
    mode: ignored for compute (forward output does not depend on `mode`).
    """
    del mode  # does not affect the forward computation
    B, D = x.shape

    num_tc, vmem_capacity, bf16_vpu = _tpu_topology_info()
    hidden_bias_dt = jnp.bfloat16 if bf16_vpu else jnp.float32

    def _weight(p):
        return jnp.asarray(p).astype(jnp.bfloat16)

    def _bias(p, dt):
        b = jnp.asarray(p)
        if b.ndim == 1:
            b = b.reshape(1, -1)
        return b.astype(dt)

    # bf16 weights feed the MXU fast path; hidden biases match the
    # elementwise dtype; final bias stays f32 (added to the f32 accumulator).
    w1, w2, w3, w4 = (_weight(params[k]) for k in ("w1", "w2", "w3", "w4"))
    b1 = _bias(params["b1"], hidden_bias_dt)
    b2 = _bias(params["b2"], hidden_bias_dt)
    b3 = _bias(params["b3"], hidden_bias_dt)
    b4 = _bias(params["b4"], jnp.float32)

    param_bytes = sum(a.size * a.dtype.itemsize for a in (w1, w2, w3, w4))
    bias_bytes = sum(a.size * a.dtype.itemsize for a in (b1, b2, b3, b4))

    def _est_vmem(tb_):
        io = 2 * 2 * tb_ * D * 4            # x + out tiles, double-buffered
        act = 4 * tb_ * (5 * D) * 4         # live f32 temps (generous)
        return int(1.3 * (param_bytes + bias_bytes + io + act)) + (4 << 20)

    # Leave headroom for compiler-internal scratch: never ask for the full
    # physical VMEM (~51 MiB cap on v7x, ~102 MiB on v5e/v6e).
    vmem_cap = int(0.8 * vmem_capacity)

    tb = _pick_batch_tile(B, batch_tile, num_tc)
    while tb > 128 and _est_vmem(tb) > vmem_cap:
        tb = max(128, _round_up(tb // 2, 128))

    vmem_limit = max(min(max(_est_vmem(tb), 32 << 20), vmem_cap), 16 << 20)

    grid = (pl.cdiv(B, tb),)

    # Resident parameter blocks: constant index_map -> single-buffered.
    def resident(shape):
        return pl.BlockSpec(shape, lambda i: tuple(0 for _ in shape),
                            pipeline_mode=pl.Buffered(1))

    kernel = _make_mlp_kernel(bf16_vpu)

    return pl.pallas_call(
        kernel,
        out_shape=jax.ShapeDtypeStruct((B, D), x.dtype),
        grid_spec=pltpu.PrefetchScalarGridSpec(
            num_scalar_prefetch=0,
            grid=grid,
            in_specs=[
                pl.BlockSpec((tb, D), lambda i: (i, 0)),      # x tile
                resident(w1.shape), resident(b1.shape),
                resident(w2.shape), resident(b2.shape),
                resident(w3.shape), resident(b3.shape),
                resident(w4.shape), resident(b4.shape),
            ],
            out_specs=pl.BlockSpec((tb, D), lambda i: (i, 0)),
        ),
        compiler_params=pltpu.CompilerParams(
            dimension_semantics=("parallel",),
            vmem_limit_bytes=int(vmem_limit),
        ),
    )(x, w1, b1, w2, b2, w3, b3, w4, b4)


# --------------------------------------------------------------------------
# Init + reference + demo
# --------------------------------------------------------------------------
def init_params(key, vector_dim=128, dtype=jnp.float32):
    """nn.Linear-style init (uniform in [-1/sqrt(fan_in), 1/sqrt(fan_in)]).
    Weights stored as (in, out)."""
    dims = [vector_dim, 3 * vector_dim, 5 * vector_dim, 3 * vector_dim, vector_dim]
    params = {}
    for li in range(4):
        fan_in, fan_out = dims[li], dims[li + 1]
        key, kw, kb = jax.random.split(key, 3)
        bound = 1.0 / jnp.sqrt(jnp.float32(fan_in))
        params[f"w{li + 1}"] = jax.random.uniform(
            kw, (fan_in, fan_out), dtype, minval=-bound, maxval=bound)
        params[f"b{li + 1}"] = jax.random.uniform(
            kb, (1, fan_out), dtype, minval=-bound, maxval=bound)
    return params


def _reference_forward(x, params):
    # Pure-JAX f32 reference of the PyTorch module.
    h = x
    h = jnp.maximum(h @ params["w1"] + params["b1"].reshape(1, -1), 0.0)
    h = jnp.maximum(h @ params["w2"] + params["b2"].reshape(1, -1), 0.0)
    h = jnp.maximum(h @ params["w3"] + params["b3"].reshape(1, -1), 0.0)
    return h @ params["w4"] + params["b4"].reshape(1, -1)


if __name__ == "__main__":
    VECTOR_DIM = 128   # module default
    BATCH = 16         # small demo batch

    key = jax.random.PRNGKey(0)
    key, kx = jax.random.split(key)
    params = init_params(key, VECTOR_DIM)
    x = jax.random.normal(kx, (BATCH, VECTOR_DIM), jnp.float32)

    out = vector_mapper_forward(x, params, mode=0)
    out = jax.block_until_ready(out)

    ref = _reference_forward(x, params)
    assert out.shape == (BATCH, VECTOR_DIM)
    # bf16 MXU operands (and bf16 elementwise on v6e/v7x) with f32
    # accumulation -> looser tolerance than a pure-f32 comparison.
    assert jnp.allclose(out, ref, atol=5e-2, rtol=5e-2), "mismatch vs reference"

    print("KERNEL_OK")
</pallas_src>

<mosaic_0001>
module attributes {stable_mosaic.version = 11 : i64} {
  func.func @kernel(%arg0: i32, %arg1: memref<16x128xf32, #tpu.memory_space<vmem>>, %arg2: memref<128x384xbf16, #tpu.memory_space<vmem>>, %arg3: memref<1x384xf32, #tpu.memory_space<vmem>>, %arg4: memref<384x640xbf16, #tpu.memory_space<vmem>>, %arg5: memref<1x640xf32, #tpu.memory_space<vmem>>, %arg6: memref<640x384xbf16, #tpu.memory_space<vmem>>, %arg7: memref<1x384xf32, #tpu.memory_space<vmem>>, %arg8: memref<384x128xbf16, #tpu.memory_space<vmem>>, %arg9: memref<1x128xf32, #tpu.memory_space<vmem>>, %arg10: memref<16x128xf32, #tpu.memory_space<vmem>>) attributes {dimension_semantics = [#tpu.dimension_semantics<parallel>], iteration_bounds = array<i64: 1>, scalar_prefetch = 0 : i64, scratch_operands = 0 : i64, tpu.core_type = #tpu.core_type<tc>, window_params = [{transform_indices = @transform_0, window_bounds = array<i64: 16, 128>}, {pipeline_mode = #tpu.pipeline_mode<synchronous>, transform_indices = @transform_1, window_bounds = array<i64: 128, 384>}, {pipeline_mode = #tpu.pipeline_mode<synchronous>, transform_indices = @transform_2, window_bounds = array<i64: 1, 384>}, {pipeline_mode = #tpu.pipeline_mode<synchronous>, transform_indices = @transform_3, window_bounds = array<i64: 384, 640>}, {pipeline_mode = #tpu.pipeline_mode<synchronous>, transform_indices = @transform_4, window_bounds = array<i64: 1, 640>}, {pipeline_mode = #tpu.pipeline_mode<synchronous>, transform_indices = @transform_5, window_bounds = array<i64: 640, 384>}, {pipeline_mode = #tpu.pipeline_mode<synchronous>, transform_indices = @transform_6, window_bounds = array<i64: 1, 384>}, {pipeline_mode = #tpu.pipeline_mode<synchronous>, transform_indices = @transform_7, window_bounds = array<i64: 384, 128>}, {pipeline_mode = #tpu.pipeline_mode<synchronous>, transform_indices = @transform_8, window_bounds = array<i64: 1, 128>}, {transform_indices = @transform_9, window_bounds = array<i64: 16, 128>}]} {
    %c0 = arith.constant 0 : index
    %c0_0 = arith.constant 0 : index
    %0 = vector.load %arg1[%c0, %c0_0] : memref<16x128xf32, #tpu.memory_space<vmem>>, vector<16x128xf32>
    %1 = arith.truncf %0 : vector<16x128xf32> to vector<16x128xbf16>
    %c0_1 = arith.constant 0 : index
    %c0_2 = arith.constant 0 : index
    %2 = vector.load %arg2[%c0_1, %c0_2] : memref<128x384xbf16, #tpu.memory_space<vmem>>, vector<128x384xbf16>
    %cst = arith.constant dense<0.000000e+00> : vector<16x384xf32>
    %3 = tpu.matmul %1, %2, %cst {dimension_numbers = #tpu.dot_dimension_numbers<[1], [0], [0], [1], [0, 0, 1, 1], [], []>} : vector<16x128xbf16>, vector<128x384xbf16>, vector<16x384xf32> -> vector<16x384xf32>
    %c0_3 = arith.constant 0 : index
    %c0_4 = arith.constant 0 : index
    %4 = vector.load %arg3[%c0_3, %c0_4] : memref<1x384xf32, #tpu.memory_space<vmem>>, vector<1x384xf32>
    %5 = vector.broadcast %4 : vector<1x384xf32> to vector<16x384xf32>
    %6 = arith.addf %3, %5 : vector<16x384xf32>
    %cst_5 = arith.constant 0.000000e+00 : f32
    %7 = vector.broadcast %cst_5 : f32 to vector<16x384xf32>
    %8 = arith.maximumf %6, %7 : vector<16x384xf32>
    %9 = arith.truncf %8 : vector<16x384xf32> to vector<16x384xbf16>
    %c0_6 = arith.constant 0 : index
    %c0_7 = arith.constant 0 : index
    %10 = vector.load %arg4[%c0_6, %c0_7] : memref<384x640xbf16, #tpu.memory_space<vmem>>, vector<384x640xbf16>
    %cst_8 = arith.constant dense<0.000000e+00> : vector<16x640xf32>
    %11 = tpu.matmul %9, %10, %cst_8 {dimension_numbers = #tpu.dot_dimension_numbers<[1], [0], [0], [1], [0, 0, 1, 1], [], []>} : vector<16x384xbf16>, vector<384x640xbf16>, vector<16x640xf32> -> vector<16x640xf32>
    %c0_9 = arith.constant 0 : index
    %c0_10 = arith.constant 0 : index
    %12 = vector.load %arg5[%c0_9, %c0_10] : memref<1x640xf32, #tpu.memory_space<vmem>>, vector<1x640xf32>
    %13 = vector.broadcast %12 : vector<1x640xf32> to vector<16x640xf32>
    %14 = arith.addf %11, %13 : vector<16x640xf32>
    %cst_11 = arith.constant 0.000000e+00 : f32
    %15 = vector.broadcast %cst_11 : f32 to vector<16x640xf32>
    %16 = arith.maximumf %14, %15 : vector<16x640xf32>
    %17 = arith.truncf %16 : vector<16x640xf32> to vector<16x640xbf16>
    %c0_12 = arith.constant 0 : index
    %c0_13 = arith.constant 0 : index
    %18 = vector.load %arg6[%c0_12, %c0_13] : memref<640x384xbf16, #tpu.memory_space<vmem>>, vector<640x384xbf16>
    %cst_14 = arith.constant dense<0.000000e+00> : vector<16x384xf32>
    %19 = tpu.matmul %17, %18, %cst_14 {dimension_numbers = #tpu.dot_dimension_numbers<[1], [0], [0], [1], [0, 0, 1, 1], [], []>} : vector<16x640xbf16>, vector<640x384xbf16>, vector<16x384xf32> -> vector<16x384xf32>
    %c0_15 = arith.constant 0 : index
    %c0_16 = arith.constant 0 : index
    %20 = vector.load %arg7[%c0_15, %c0_16] : memref<1x384xf32, #tpu.memory_space<vmem>>, vector<1x384xf32>
    %21 = vector.broadcast %20 : vector<1x384xf32> to vector<16x384xf32>
    %22 = arith.addf %19, %21 : vector<16x384xf32>
    %cst_17 = arith.constant 0.000000e+00 : f32
    %23 = vector.broadcast %cst_17 : f32 to vector<16x384xf32>
    %24 = arith.maximumf %22, %23 : vector<16x384xf32>
    %25 = arith.truncf %24 : vector<16x384xf32> to vector<16x384xbf16>
    %c0_18 = arith.constant 0 : index
    %c0_19 = arith.constant 0 : index
    %26 = vector.load %arg8[%c0_18, %c0_19] : memref<384x128xbf16, #tpu.memory_space<vmem>>, vector<384x128xbf16>
    %cst_20 = arith.constant dense<0.000000e+00> : vector<16x128xf32>
    %27 = tpu.matmul %25, %26, %cst_20 {dimension_numbers = #tpu.dot_dimension_numbers<[1], [0], [0], [1], [0, 0, 1, 1], [], []>} : vector<16x384xbf16>, vector<384x128xbf16>, vector<16x128xf32> -> vector<16x128xf32>
    %c0_21 = arith.constant 0 : index
    %c0_22 = arith.constant 0 : index
    %28 = vector.load %arg9[%c0_21, %c0_22] : memref<1x128xf32, #tpu.memory_space<vmem>>, vector<1x128xf32>
    %29 = vector.broadcast %28 : vector<1x128xf32> to vector<16x128xf32>
    %30 = arith.addf %27, %29 : vector<16x128xf32>
    %c0_23 = arith.constant 0 : index
    %c0_24 = arith.constant 0 : index
    %31 = vector.load %arg10[%c0_23, %c0_24] : memref<16x128xf32, #tpu.memory_space<vmem>>, vector<16x128xf32>
    tpu.vector_store %arg10[%c0_23, %c0_24], %30 {strides = array<i32>} : memref<16x128xf32, #tpu.memory_space<vmem>>, vector<16x128xf32>,
    return
  }
  func.func @transform_0(%arg0: i32) -> (i32, i32) {
    %c0_i32 = arith.constant 0 : i32
    %c0_i32_0 = arith.constant 0 : i32
    return %arg0, %c0_i32 : i32, i32
  }
  func.func @transform_1(%arg0: i32) -> (i32, i32) {
    %c0_i32 = arith.constant 0 : i32
    %c0_i32_0 = arith.constant 0 : i32
    %c0_i32_1 = arith.constant 0 : i32
    return %c0_i32, %c0_i32_0 : i32, i32
  }
  func.func @transform_2(%arg0: i32) -> (i32, i32) {
    %c0_i32 = arith.constant 0 : i32
    %c0_i32_0 = arith.constant 0 : i32
    %c0_i32_1 = arith.constant 0 : i32
    return %c0_i32, %c0_i32_0 : i32, i32
  }
  func.func @transform_3(%arg0: i32) -> (i32, i32) {
    %c0_i32 = arith.constant 0 : i32
    %c0_i32_0 = arith.constant 0 : i32
    %c0_i32_1 = arith.constant 0 : i32
    return %c0_i32, %c0_i32_0 : i32, i32
  }
  func.func @transform_4(%arg0: i32) -> (i32, i32) {
    %c0_i32 = arith.constant 0 : i32
    %c0_i32_0 = arith.constant 0 : i32
    %c0_i32_1 = arith.constant 0 : i32
    return %c0_i32, %c0_i32_0 : i32, i32
  }
  func.func @transform_5(%arg0: i32) -> (i32, i32) {
    %c0_i32 = arith.constant 0 : i32
    %c0_i32_0 = arith.constant 0 : i32
    %c0_i32_1 = arith.constant 0 : i32
    return %c0_i32, %c0_i32_0 : i32, i32
  }
  func.func @transform_6(%arg0: i32) -> (i32, i32) {
    %c0_i32 = arith.constant 0 : i32
    %c0_i32_0 = arith.constant 0 : i32
    %c0_i32_1 = arith.constant 0 : i32
    return %c0_i32, %c0_i32_0 : i32, i32
  }
  func.func @transform_7(%arg0: i32) -> (i32, i32) {
    %c0_i32 = arith.constant 0 : i32
    %c0_i32_0 = arith.constant 0 : i32
    %c0_i32_1 = arith.constant 0 : i32
    return %c0_i32, %c0_i32_0 : i32, i32
  }
  func.func @transform_8(%arg0: i32) -> (i32, i32) {
    %c0_i32 = arith.constant 0 : i32
    %c0_i32_0 = arith.constant 0 : i32
    %c0_i32_1 = arith.constant 0 : i32
    return %c0_i32, %c0_i32_0 : i32, i32
  }
  func.func @transform_9(%arg0: i32) -> (i32, i32) {
    %c0_i32 = arith.constant 0 : i32
    %c0_i32_0 = arith.constant 0 : i32
    return %arg0, %c0_i32 : i32, i32
  }
}

</mosaic_0001>

<bundles_post_ra>
// kernel: tpu_custom_call.1
= control target key start
LH: loop header
LB: loop body
LE: loop exit
PB: predicated region body
PF: predicated region fallthrough
CT: control target
= control target key end

     0   :  { %14 = vsyncpa [#allocation3], 0  ;;  %s4134_s0 = inlined_call_operand.hbm [shape: f32[16,128], index: 0, kind: input, shape index: {}]   ;;  %s4135_s1 = inlined_call_operand.hbm [shape: bf16[128,384], index: 1, kind: input, shape index: {}]   ;;  %s4136_s2 = inlined_call_operand.vmem [shape: f32[1,384], index: 2, kind: input, shape index: {}]   ;;  %s4137_s3 = inlined_call_operand.hbm [shape: bf16[384,640], index: 3, kind: input, shape index: {}]   ;;  %s4138_s4 = inlined_call_operand.vmem [shape: f32[1,640], index: 4, kind: input, shape index: {}]   ;;  %s4139_s5 = inlined_call_operand.hbm [shape: bf16[640,384], index: 5, kind: input, shape index: {}]   ;;  %s4140_s6 = inlined_call_operand.vmem [shape: f32[1,384], index: 6, kind: input, shape index: {}]   ;;  %s4141_s7 = inlined_call_operand.hbm [shape: bf16[384,128], index: 7, kind: input, shape index: {}]   ;;  %s4142_s8 = inlined_call_operand.vmem [shape: f32[1,128], index: 8, kind: input, shape index: {}]   ;;  %s4143_s9 = inlined_call_operand.hbm [shape: f32[16,128], index: 9, kind: output, shape index: {}]  }
   0x1   :  { %15 = vsyncpa [#allocation6], 0 }
   0x2   :  { %16 = vsyncpa [#allocation9], 0 }
   0x3   :  { %17 = vsyncpa [#allocation4], 0  ;;  %s3881_s30 = smov [#allocation5]   ;;  %s3741_s13 = scalar_lea.hbm %s4135_s1, 3072 }
   0x4   :  { %s35_s10 = sshll.u32 %s3881_s30, 4  ;;  %p3742_p0 = scmp.ne.s32.totalorder %s4135_s1, %s3741_s13  ;;  %s36_s10 = int_to_ptr.vmem [resolvable:$true] %s35_s10 }
   0x5   :  { %p3745_p1 = scmp.lt.u32.totalorder %s3741_s13, %s4135_s1 }
   0x7   :  { %p3747_p2 = pnand %p3745_p1, %p3742_p0 }
   0x9   :  { %3750 = shalt.err (!%p3747_p2)
}
   0xa   :  { %s3751_s18 = scalar_lea.vmem %s36_s10, 3072  ;;  %p3756_p4 = scmp.lt.s32.totalorder %s36_s10, %s36_s10 }
   0xb   :  { %p3752_p3 = scmp.ne.s32.totalorder %s36_s10, %s3751_s18  ;;  %p3757_p5 = scmp.lt.s32.totalorder %s3751_s18, %s3751_s18 }
   0xd   :  { %p3758_p6 = por %p3757_p5, %p3756_p4 }
   0xf   :  { %p3759_p7 = pnand %p3758_p6, %p3752_p3 }
  0x11   :  { %3762 = shalt.err (!%p3759_p7)
}
  0x12   :  { %s3882_s19 = smov 192   ;;  %s3883_s20 = smov 12  }
  0x13   :  { %41 = dma.hbm_to_vmem [thread:$0]  %s4135_s1, 3072, %s36_s10, [#allocation6], %s3882_s19, %s3882_s19, %s3883_s20  }
  0x14   :  { %s3884_s23 = smov [#allocation8]   ;;  %s3885_s25 = smov [#allocation2]  }
  0x15   :  { %s63_s24 = sshll.u32 %s3884_s23, 4  ;;  %s23_s26 = sshll.u32 %s3885_s25, 4  ;;  %s64_s24 = int_to_ptr.vmem [resolvable:$true] %s63_s24  ;;  %s24_s26 = int_to_ptr.vmem [resolvable:$true] %s23_s26 }
  0x16   :  { %s3763_s29 = scalar_lea.hbm %s4139_s5, 15360 }
  0x17   :  { %p3764_p8 = scmp.ne.s32.totalorder %s4139_s5, %s3763_s29  ;;  %p3767_p9 = scmp.lt.u32.totalorder %s3763_s29, %s4139_s5 }
  0x19   :  { %p3769_p10 = pnand %p3767_p9, %p3764_p8 }
  0x1b   :  { %3772 = shalt.err (!%p3769_p10)
}
  0x1c   :  { %s3773_s1 = scalar_lea.vmem %s64_s24, 15360  ;;  %p3778_p12 = scmp.lt.s32.totalorder %s64_s24, %s64_s24 }
  0x1d   :  { %p3774_p11 = scmp.ne.s32.totalorder %s64_s24, %s3773_s1  ;;  %p3779_p13 = scmp.lt.s32.totalorder %s3773_s1, %s3773_s1 }
  0x1f   :  { %p3780_p0 = por %p3779_p13, %p3778_p12 }
  0x21   :  { %p3781_p1 = pnand %p3780_p0, %p3774_p11 }
  0x23   :  { %3784 = shalt.err (!%p3781_p1)
}
  0x24   :  { %69 = dma.hbm_to_vmem [thread:$0]  %s4139_s5, 15360, %s64_s24, [#allocation9], %s3882_s19, %s3882_s19, %s3883_s20  }
  0x25   :  { %s3785_s17 = scalar_lea.hbm %s4134_s0, 256 }
  0x26   :  { %p3786_p2 = scmp.ne.s32.totalorder %s4134_s0, %s3785_s17  ;;  %p3789_p3 = scmp.lt.u32.totalorder %s3785_s17, %s4134_s0 }
  0x28   :  { %p3791_p4 = pnand %p3789_p3, %p3786_p2 }
  0x2a   :  { %3794 = shalt.err (!%p3791_p4)
}
  0x2b   :  { %s3795_s25 = scalar_lea.vmem %s24_s26, 256  ;;  %p3800_p6 = scmp.lt.s32.totalorder %s24_s26, %s24_s26 }
  0x2c   :  { %p3796_p5 = scmp.ne.s32.totalorder %s24_s26, %s3795_s25  ;;  %p3801_p7 = scmp.lt.s32.totalorder %s3795_s25, %s3795_s25 }
  0x2e   :  { %p3802_p8 = por %p3801_p7, %p3800_p6 }
  0x30   :  { %p3803_p9 = pnand %p3802_p8, %p3796_p5 }
  0x32   :  { %3806 = shalt.err (!%p3803_p9)
}
  0x33   :  { %s3886_s5 = smov 128   ;;  %s3887_s19 = smov 8  }
  0x34   :  { %29 = dma.hbm_to_vmem [thread:$0]  %s4134_s0, 256, %s24_s26, [#allocation3], %s3886_s5, %s3886_s5, %s3887_s19  }
  0x35   :  { %s3888_s27 = smov [#allocation7]   ;;  %s3807_s11 = scalar_lea.hbm %s4137_s3, 15360 }
  0x36   :  { %s49_s28 = sshll.u32 %s3888_s27, 4  ;;  %p3808_p10 = scmp.ne.s32.totalorder %s4137_s3, %s3807_s11  ;;  %s50_s28 = int_to_ptr.vmem [resolvable:$true] %s49_s28 }
  0x37   :  { %p3811_p11 = scmp.lt.u32.totalorder %s3807_s11, %s4137_s3 }
  0x39   :  { %p3813_p12 = pnand %p3811_p11, %p3808_p10 }
  0x3b   :  { %3816 = shalt.err (!%p3813_p12)
}
  0x3c   :  { %s3817_s14 = scalar_lea.vmem %s50_s28, 15360  ;;  %p3822_p0 = scmp.lt.s32.totalorder %s50_s28, %s50_s28 }
  0x3d   :  { %p3818_p13 = scmp.ne.s32.totalorder %s50_s28, %s3817_s14  ;;  %p3823_p1 = scmp.lt.s32.totalorder %s3817_s14, %s3817_s14 }
  0x3f   :  { %p3824_p2 = por %p3823_p1, %p3822_p0 }
  0x41   :  { %p3825_p3 = pnand %p3824_p2, %p3818_p13 }
  0x43   :  { %3828 = shalt.err (!%p3825_p3)
}
  0x44   :  { %s3889_s0 = smov 320   ;;  %s3890_s26 = smov 20  }
  0x45   :  { %55 = dma.hbm_to_vmem [thread:$0]  %s4137_s3, 15360, %s50_s28, [#allocation6], %s3889_s0, %s3889_s0, %s3890_s26  }
  0x46   :  { %s3891_s17 = smov [#allocation10]   ;;  %s3829_s23 = scalar_lea.hbm %s4141_s7, 3072 }
  0x47   :  { %s77_s18 = sshll.u32 %s3891_s17, 4  ;;  %p3830_p4 = scmp.ne.s32.totalorder %s4141_s7, %s3829_s23  ;;  %s78_s18 = int_to_ptr.vmem [resolvable:$true] %s77_s18 }
  0x48   :  { %p3833_p5 = scmp.lt.u32.totalorder %s3829_s23, %s4141_s7 }
  0x4a   :  { %p3835_p6 = pnand %p3833_p5, %p3830_p4 }
  0x4c   :  { %3838 = shalt.err (!%p3835_p6)
}
  0x4d   :  { %s3839_s29 = scalar_lea.vmem %s78_s18, 3072  ;;  %p3844_p8 = scmp.lt.s32.totalorder %s78_s18, %s78_s18 }
  0x4e   :  { %p3840_p7 = scmp.ne.s32.totalorder %s78_s18, %s3839_s29  ;;  %p3845_p9 = scmp.lt.s32.totalorder %s3839_s29, %s3839_s29 }
  0x50   :  { %p3846_p10 = por %p3845_p9, %p3844_p8 }
  0x52   :  { %p3847_p11 = pnand %p3846_p10, %p3840_p7 }
  0x54   :  { %3850 = shalt.err (!%p3847_p11)
}
  0x55   :  { %s3892_s3 = smov 64   ;;  %s3893_s28 = smov 4  }
  0x56   :  { %83 = dma.hbm_to_vmem [thread:$0]  %s4141_s7, 3072, %s78_s18, [#allocation9], %s3892_s3, %s3892_s3, %s3893_s28  }
  0x57   :  { %3873 = dma.done.wait [#allocation3], 256  }
  0x58   :  { %3874 = vsyncadd [#allocation3], 4294967040 }
  0x59   :  { %3875 = dma.done.wait [#allocation6], 18432  }
  0x5a   :  { %3876 = vsyncadd [#allocation6], 4294948864 }
  0x5b   :  { %3877 = dma.done.wait [#allocation9], 18432  }
  0x5c   :  { %3878 = vsyncadd [#allocation9], 4294948864  ;;  %v3894_v0 = vmov 0.0   ;;  %v3895_v1 = vmov 0   ;;  %vm3896_vm0 = vmmov 0   ;;  %v102_v23 = vld [vmem:[#allocation2] sm:$0xff] }
  0x5d   :  { %3232 = vmatprep.subr.bf16.mxu1 %v3894_v0  ;;  %314 = vmatprep.mubr.bf16.mxu0 %v3895_v1  ;;  %v3357_v2 = vld [vmem:[#allocation5 + $0x4] ss:$12 sps:$4 sm:$0xff]   ;;  %v3359_v3 = vld [vmem:[#allocation5] ss:$12 sps:$4 sm:$0xff]   ;;  %v3360_v4 = vld [vmem:[#allocation5 + $0x1c] ss:$12 sps:$4 sm:$0xff]  }
  0x5e   :  { %3248 = vmatprep.mubr.msk.bf16.mxu1 %vm3896_vm0, %v3894_v0  ;;  %282 = vmatprep.subr.bf16.mxu0 %v3357_v2  ;;  %v3362_v5 = vld [vmem:[#allocation5 + $0x18] ss:$12 sps:$4 sm:$0xff]   ;;  %v3363_v6 = vld [vmem:[#allocation5 + $0x34] ss:$12 sps:$4 sm:$0xff]   ;;  %v3365_v7 = vld [vmem:[#allocation5 + $0x30] ss:$12 sps:$4 sm:$0xff]  }
  0x5f   :  { %283 = vmatpush1.bf16.msra.mxu0 %v3359_v3  ;;  %v3366_v8 = vld [vmem:[#allocation5 + $0x4c] ss:$12 sps:$4 sm:$0xff]   ;;  %v3368_v9 = vld [vmem:[#allocation5 + $0x48] ss:$12 sps:$4 sm:$0xff]   ;;  %v3369_v11 = vld [vmem:[#allocation5 + $0x64] ss:$12 sps:$4 sm:$0xff]  }
  0x60   :  { %284 = vmatprep.subr.bf16.mxu0 %v3360_v4  ;;  %v3381_v10 = vld [vmem:[#allocation5 + $0x8] ss:$12 sps:$4 sm:$0xff]   ;;  %v3382_v12 = vld [vmem:[#allocation5 + $0x20] ss:$12 sps:$4 sm:$0xff]   ;;  %v3383_v15 = vld [vmem:[#allocation5 + $0x38] ss:$12 sps:$4 sm:$0xff]  }
  0x61   :  { %3233 = vmatpush3.bf16.msra.mxu1 %v3381_v10  ;;  %v3371_v13 = vld [vmem:[#allocation5 + $0x60] ss:$12 sps:$4 sm:$0xff]   ;;  %v3372_v14 = vld [vmem:[#allocation5 + $0x7c] ss:$12 sps:$4 sm:$0xff]   ;;  %v3374_v16 = vld [vmem:[#allocation5 + $0x78] ss:$12 sps:$4 sm:$0xff]  }
  0x62   :  { %3234 = vmatprep.subr.bf16.mxu1 %v3894_v0  ;;  %v3375_v17 = vld [vmem:[#allocation5 + $0x94] ss:$12 sps:$4 sm:$0xff]   ;;  %v3384_v18 = vld [vmem:[#allocation5 + $0x50] ss:$12 sps:$4 sm:$0xff]   ;;  %v3378_v20 = vld [vmem:[#allocation5 + $0xac] ss:$12 sps:$4 sm:$0xff]  }
  0x63   :  { %285 = vmatpush1.bf16.msra.mxu0 %v3362_v5  ;;  %v3377_v19 = vld [vmem:[#allocation5 + $0x90] ss:$12 sps:$4 sm:$0xff]   ;;  %v3380_v21 = vld [vmem:[#allocation5 + $0xa8] ss:$12 sps:$4 sm:$0xff]   ;;  %v3391_v25 = vld [vmem:[#allocation7 + $0x4] ss:$20 sps:$4 sm:$0xff]  }
  0x64   :  { %286 = vmatprep.subr.bf16.mxu0 %v3363_v6  ;;  %v3385_v22 = vld [vmem:[#allocation5 + $0x68] ss:$12 sps:$4 sm:$0xff]   ;;  %v103_v24 = vld [vmem:[#allocation2 + $0x8] sm:$0xff]  ;;  %v3386_v26 = vld [vmem:[#allocation5 + $0x80] ss:$12 sps:$4 sm:$0xff]   ;;  %s3897_s14 = smov [#allocation11]  }
  0x65   :  { %3235 = vmatpush3.bf16.msra.mxu1 %v3382_v12  ;;  %v104_v27 = vpack.c.bf16 %v103_v24, %v102_v23  ;;  %v3389_v28 = vld [vmem:[#allocation7] ss:$20 sps:$4 sm:$0xff]   ;;  %v3387_v30 = vld [vmem:[#allocation5 + $0x98] ss:$12 sps:$4 sm:$0xff]   ;;  %v3395_v31 = vld [vmem:[#allocation7 + $0x28] ss:$20 sps:$4 sm:$0xff]  }
  0x66   :  { %3236 = vmatprep.subr.bf16.mxu1 %v3894_v0  ;;  %v3397_v29 = vld [vmem:[#allocation7 + $0x2c] ss:$20 sps:$4 sm:$0xff]   ;;  %v3403_v32 = vld [vmem:[#allocation7 + $0x54] ss:$20 sps:$4 sm:$0xff]   ;;  %v3388_v33 = vld [vmem:[#allocation5 + $0xb0] ss:$12 sps:$4 sm:$0xff]  }
  0x67   :  { %287 = vmatpush1.bf16.msra.mxu0 %v3365_v7  ;;  %v3394_v34 = vld [vmem:[#allocation7 + $0xc] ss:$20 sps:$4 sm:$0xff]   ;;  %v3401_v35 = vld [vmem:[#allocation7 + $0x50] ss:$20 sps:$4 sm:$0xff]   ;;  %v3392_v37 = vld [vmem:[#allocation7 + $0x8] ss:$20 sps:$4 sm:$0xff]  }
  0x68   :  { %288 = vmatprep.subr.bf16.mxu0 %v3366_v8  ;;  %v3409_v36 = vld [vmem:[#allocation7 + $0x7c] ss:$20 sps:$4 sm:$0xff]   ;;  %v3400_v38 = vld [vmem:[#allocation7 + $0x34] ss:$20 sps:$4 sm:$0xff]   ;;  %v3407_v39 = vld [vmem:[#allocation7 + $0x78] ss:$20 sps:$4 sm:$0xff]  }
  0x69   :  { %3237 = vmatpush3.bf16.msra.mxu1 %v3383_v15  ;;  %v3415_v40 = vld [vmem:[#allocation7 + $0xa4] ss:$20 sps:$4 sm:$0xff]   ;;  %v3406_v42 = vld [vmem:[#allocation7 + $0x5c] ss:$20 sps:$4 sm:$0xff]   ;;  %v3413_v43 = vld [vmem:[#allocation7 + $0xa0] ss:$20 sps:$4 sm:$0xff]  }
  0x6a   :  { %3238 = vmatprep.subr.bf16.mxu1 %v3894_v0  ;;  %v3398_v41 = vld [vmem:[#allocation7 + $0x30] ss:$20 sps:$4 sm:$0xff]   ;;  %v3421_v44 = vld [vmem:[#allocation7 + $0xcc] ss:$20 sps:$4 sm:$0xff]   ;;  %v3419_v47 = vld [vmem:[#allocation7 + $0xc8] ss:$20 sps:$4 sm:$0xff]  }
  0x6b   :  { %289 = vmatpush1.bf16.msra.mxu0 %v3368_v9  ;;  %v3404_v45 = vld [vmem:[#allocation7 + $0x58] ss:$20 sps:$4 sm:$0xff]   ;;  %v3427_v48 = vld [vmem:[#allocation7 + $0xf4] ss:$20 sps:$4 sm:$0xff]   ;;  %v3425_v51 = vld [vmem:[#allocation7 + $0xf0] ss:$20 sps:$4 sm:$0xff]  }
  0x6c   :  { %290 = vmatprep.subr.bf16.mxu0 %v3369_v11  ;;  %v3412_v46 = vld [vmem:[#allocation7 + $0x84] ss:$20 sps:$4 sm:$0xff]   ;;  %v3410_v49 = vld [vmem:[#allocation7 + $0x80] ss:$20 sps:$4 sm:$0xff]   ;;  %v3416_v52 = vld [vmem:[#allocation7 + $0xa8] ss:$20 sps:$4 sm:$0xff]  }
  0x6d   :  { %3239 = vmatpush3.bf16.msra.mxu1 %v3384_v18  ;;  %v3418_v50 = vld [vmem:[#allocation7 + $0xac] ss:$20 sps:$4 sm:$0xff]   ;;  %v3424_v53 = vld [vmem:[#allocation7 + $0xd4] ss:$20 sps:$4 sm:$0xff]   ;;  %v3433_v54 = vld [vmem:[#allocation7 + $0x11c] ss:$20 sps:$4 sm:$0xff]  }
  0x6e   :  { %3240 = vmatprep.subr.bf16.mxu1 %v3894_v0  ;;  %v3431_v55 = vld [vmem:[#allocation7 + $0x118] ss:$20 sps:$4 sm:$0xff]   ;;  %v3422_v57 = vld [vmem:[#allocation7 + $0xd0] ss:$20 sps:$4 sm:$0xff]   ;;  %v3437_v59 = vld [vmem:[#allocation7 + $0x140] ss:$20 sps:$4 sm:$0xff]  }
  0x6f   :  { %291 = vmatpush1.bf16.msra.mxu0 %v3371_v13  ;;  %v3439_v56 = vld [vmem:[#allocation7 + $0x144] ss:$20 sps:$4 sm:$0xff]   ;;  %v3430_v58 = vld [vmem:[#allocation7 + $0xfc] ss:$20 sps:$4 sm:$0xff]   ;;  %v3445_v60 = vld [vmem:[#allocation7 + $0x16c] ss:$20 sps:$4 sm:$0xff]  }
  0x70   :  { %292 = vmatprep.subr.bf16.mxu0 %v3372_v14  ;;  %v3428_v61 = vld [vmem:[#allocation7 + $0xf8] ss:$20 sps:$4 sm:$0xff]   ;;  %v3443_v63 = vld [vmem:[#allocation7 + $0x168] ss:$20 sps:$4 sm:$0xff]   ;;  %v3434_v3 = vld [vmem:[#allocation7 + $0x120] ss:$20 sps:$4 sm:$0xff]  }
  0x71   :  { %3241 = vmatpush3.bf16.msra.mxu1 %v3385_v22  ;;  %v3436_v62 = vld [vmem:[#allocation7 + $0x124] ss:$20 sps:$4 sm:$0xff]   ;;  %v3451_v2 = vld [vmem:[#allocation7 + $0x194] ss:$20 sps:$4 sm:$0xff]   ;;  %v3442_v4 = vld [vmem:[#allocation7 + $0x14c] ss:$20 sps:$4 sm:$0xff]  }
  0x72   :  { %3242 = vmatprep.subr.bf16.mxu1 %v3894_v0  ;;  %v3449_v5 = vld [vmem:[#allocation7 + $0x190] ss:$20 sps:$4 sm:$0xff]   ;;  %v3440_v7 = vld [vmem:[#allocation7 + $0x148] ss:$20 sps:$4 sm:$0xff]   ;;  %v3455_v9 = vld [vmem:[#allocation7 + $0x1b8] ss:$20 sps:$4 sm:$0xff]  }
  0x73   :  { %293 = vmatpush1.bf16.msra.mxu0 %v3374_v16  ;;  %v3457_v6 = vld [vmem:[#allocation7 + $0x1bc] ss:$20 sps:$4 sm:$0xff]   ;;  %v3448_v8 = vld [vmem:[#allocation7 + $0x174] ss:$20 sps:$4 sm:$0xff]   ;;  %v3463_v10 = vld [vmem:[#allocation7 + $0x1e4] ss:$20 sps:$4 sm:$0xff]  }
  0x74   :  { %294 = vmatprep.subr.bf16.mxu0 %v3375_v17  ;;  %v3446_v11 = vld [vmem:[#allocation7 + $0x170] ss:$20 sps:$4 sm:$0xff]   ;;  %v3461_v13 = vld [vmem:[#allocation7 + $0x1e0] ss:$20 sps:$4 sm:$0xff]   ;;  %v3452_v15 = vld [vmem:[#allocation7 + $0x198] ss:$20 sps:$4 sm:$0xff]  }
  0x75   :  { %3243 = vmatpush3.bf16.msra.mxu1 %v3386_v26  ;;  %v3454_v12 = vld [vmem:[#allocation7 + $0x19c] ss:$20 sps:$4 sm:$0xff]   ;;  %v3469_v14 = vld [vmem:[#allocation7 + $0x20c] ss:$20 sps:$4 sm:$0xff]   ;;  %v3460_v16 = vld [vmem:[#allocation7 + $0x1c4] ss:$20 sps:$4 sm:$0xff]  }
  0x76   :  { %3244 = vmatprep.subr.bf16.mxu1 %v3894_v0  ;;  %v3467_v17 = vld [vmem:[#allocation7 + $0x208] ss:$20 sps:$4 sm:$0xff]   ;;  %v3458_v18 = vld [vmem:[#allocation7 + $0x1c0] ss:$20 sps:$4 sm:$0xff]   ;;  %v3470_v22 = vld [vmem:[#allocation7 + $0x210] ss:$20 sps:$4 sm:$0xff]  }
  0x77   :  { %295 = vmatpush1.bf16.msra.mxu0 %v3377_v19  ;;  %v3466_v19 = vld [vmem:[#allocation7 + $0x1ec] ss:$20 sps:$4 sm:$0xff]   ;;  %v3475_v23 = vld [vmem:[#allocation7 + $0x234] ss:$20 sps:$4 sm:$0xff]   ;;  %v3478_v24 = vld [vmem:[#allocation7 + $0x23c] ss:$20 sps:$4 sm:$0xff]  }
  0x78   :  { %296 = vmatprep.subr.bf16.mxu0 %v3378_v20  ;;  %v3464_v20 = vld [vmem:[#allocation7 + $0x1e8] ss:$20 sps:$4 sm:$0xff]   ;;  %v3476_v26 = vld [vmem:[#allocation7 + $0x238] ss:$20 sps:$4 sm:$0xff]   ;;  %s2805_s0 = sshll.u32 %s3897_s14, 4  ;;  %s2806_s0 = int_to_ptr.vmem [resolvable:$true] %s2805_s0 }
  0x79   :  { %3245 = vmatpush3.bf16.msra.mxu1 %v3387_v30  ;;  %v3482_v30 = vld [vmem:[#allocation7 + $0x260] ss:$20 sps:$4 sm:$0xff]   ;;  %s3851_s26 = scalar_lea.vmem %s2806_s0, 256  ;;  %p3856_p13 = scmp.lt.s32.totalorder %s2806_s0, %s2806_s0 }
  0x7a   :  { %3246 = vmatprep.subr.bf16.mxu1 %v3894_v0  ;;  %p3852_p12 = scmp.ne.s32.totalorder %s2806_s0, %s3851_s26  ;;  %p3857_p0 = scmp.lt.s32.totalorder %s3851_s26, %s3851_s26 }
  0x7b   :  { %297 = vmatpush1.bf16.msra.mxu0 %v3380_v21  ;;  %v3472_v21 = vld [vmem:[#allocation7 + $0x214] ss:$20 sps:$4 sm:$0xff]  }
  0x7c   :  { %1170 = vmatprep.subr.bf16.mxu0 %v3391_v25  ;;  %v3473_v25 = vld [vmem:[#allocation7 + $0x230] ss:$20 sps:$4 sm:$0xff]   ;;  %p3858_p1 = por %p3857_p0, %p3856_p13 }
  0x7d   :  { %3247 = vmatpush3.bf16.msra.mxu1 %v3388_v33  ;;  %v139_v33 = vlaneseq }
  0x7e   :  { %315 = vmatmul.mubr.bf16.vlgmr.msra.gmra.mrb[0].mxu0 %v104_v27  ;;  %1256 = vmatprep.subr.bf16.mxu1 %v3394_v34  ;;  %p3859_p2 = pnand %p3858_p1, %p3852_p12 }
  0x7f   :  { %1171 = vmatpush1.bf16.msra.mxu0 %v3389_v28  ;;  %v3484_v28 = vld [vmem:[#allocation7 + $0x264] ss:$20 sps:$4 sm:$0xff]   ;;  %v4022_v34 = vshrl.u32 %v139_v33, 7 }
  0x80   :  { %1172 = vmatprep.subr.bf16.mxu0 %v3397_v29  ;;  %3249 = vmatmul.mubr.bf16.vlgmr.msra.gmra.mrb[0].mxu1 %v104_v27  ;;  %v3481_v27 = vld [vmem:[#allocation7 + $0x25c] ss:$20 sps:$4 sm:$0xff]   ;;  %v3479_v29 = vld [vmem:[#allocation7 + $0x258] ss:$20 sps:$4 sm:$0xff]  }
  0x81   :  { %1257 = vmatpush1.bf16.msra.mxu1 %v3392_v37  ;;  %v4031_v37 = vsub.s32 1, %v4022_v34  ;;  %v3533_v33 = vld [vmem:[#allocation7 + $0x150] ss:$20 sps:$4 sm:$0xff]  }
  0x82   :  { %1258 = vmatprep.subr.bf16.mxu1 %v3400_v38 }
  0x83   :  { %1173 = vmatpush1.bf16.msra.mxu0 %v3395_v31  ;;  %v3487_v31 = vld [vmem:[#allocation7 + $0x284] ss:$20 sps:$4 sm:$0xff]  }
  0x84   :  { %1174 = vmatprep.subr.bf16.mxu0 %v3403_v32  ;;  %v3490_v32 = vld [vmem:[#allocation7 + $0x28c] ss:$20 sps:$4 sm:$0xff]  }
  0x85   :  { %1259 = vmatpush1.bf16.msra.mxu1 %v3398_v41 }
  0x86   :  { %1260 = vmatprep.subr.bf16.mxu1 %v3406_v42 }
  0x87   :  { %1175 = vmatpush1.bf16.msra.mxu0 %v3401_v35  ;;  %v4025_v35 = vsub.s32 0, %v4022_v34 }
  0x88   :  { %1176 = vmatprep.subr.bf16.mxu0 %v3409_v36  ;;  %v137_v36 = vld [vmem:[%s4136_s2] sm:$0x7] }
  0x89   :  { %1261 = vmatpush1.bf16.msra.mxu1 %v3404_v45  ;;  %v142_v38 = vrot.slane %v137_v36, %v4025_v35 }
  0x8a   :  { %1262 = vmatprep.subr.bf16.mxu1 %v3412_v46 }
  0x8b   :  { %1177 = vmatpush1.bf16.msra.mxu0 %v3407_v39  ;;  %v146_v39 = vrot.slane %v137_v36, %v4031_v37 }
  0x8c   :  { %1178 = vmatprep.subr.bf16.mxu0 %v3415_v40 }
  0x8d   :  { %1263 = vmatpush1.bf16.msra.mxu1 %v3410_v49 }
  0x8e   :  { %1264 = vmatprep.subr.bf16.mxu1 %v3418_v50 }
  0x8f   :  { %1179 = vmatpush1.bf16.msra.mxu0 %v3413_v43 }
  0x90   :  { %1180 = vmatprep.subr.bf16.mxu0 %v3421_v44 }
  0x91   :  { %1265 = vmatpush1.bf16.msra.mxu1 %v3416_v52 }
  0x92   :  { %1266 = vmatprep.subr.bf16.mxu1 %v3424_v53 }
  0x93   :  { %1181 = vmatpush1.bf16.msra.mxu0 %v3419_v47  ;;  %v4036_v47 = vsub.s32 2, %v4022_v34 }
  0x94   :  { %1182 = vmatprep.subr.bf16.mxu0 %v3427_v48 }
  0x95   :  { %1267 = vmatpush1.bf16.msra.mxu1 %v3422_v57  ;;  %v3488_v57 = vld [vmem:[#allocation7 + $0x288] ss:$20 sps:$4 sm:$0xff]  }
  0x96   :  { %1268 = vmatprep.subr.bf16.mxu1 %v3430_v58  ;;  %v3493_v58 = vld [vmem:[#allocation7 + $0x2ac] ss:$20 sps:$4 sm:$0xff]  }
  0x97   :  { %1183 = vmatpush1.bf16.msra.mxu0 %v3425_v51 }
  0x98   :  { %1184 = vmatprep.subr.bf16.mxu0 %v3433_v54  ;;  %v150_v54 = vrot.slane %v137_v36, %v4036_v47  ;;  %v3534_v36 = vld [vmem:[#allocation7 + $0x10] ss:$20 sps:$4 sm:$0xff]  }
  0x99   :  { %1269 = vmatpush1.bf16.msra.mxu1 %v3428_v61 }
  0x9a   :  { %1270 = vmatprep.subr.bf16.mxu1 %v3436_v62 }
  0x9b   :  { %1185 = vmatpush1.bf16.msra.mxu0 %v3431_v55 }
  0x9c   :  { %1186 = vmatprep.subr.bf16.mxu0 %v3439_v56  ;;  %v3485_v56 = vld [vmem:[#allocation7 + $0x280] ss:$20 sps:$4 sm:$0xff]  }
  0x9d   :  { %1271 = vmatpush1.bf16.msra.mxu1 %v3434_v3 }
  0x9e   :  { %1272 = vmatprep.subr.bf16.mxu1 %v3442_v4  ;;  %v3499_v4 = vld [vmem:[#allocation7 + $0x2d4] ss:$20 sps:$4 sm:$0xff]  }
  0x9f   :  { %1187 = vmatpush1.bf16.msra.mxu0 %v3437_v59  ;;  %v3496_v59 = vld [vmem:[#allocation7 + $0x2b4] ss:$20 sps:$4 sm:$0xff]  }
  0xa0   :  { %1188 = vmatprep.subr.bf16.mxu0 %v3445_v60 }
  0xa1   :  { %1273 = vmatpush1.bf16.msra.mxu1 %v3440_v7 }
  0xa2   :  { %1274 = vmatprep.subr.bf16.mxu1 %v3448_v8 }
  0xa3   :  { %1189 = vmatpush1.bf16.msra.mxu0 %v3443_v63  ;;  %v3491_v63 = vld [vmem:[#allocation7 + $0x2a8] ss:$20 sps:$4 sm:$0xff]  }
  0xa4   :  { %1190 = vmatprep.subr.bf16.mxu0 %v3451_v2  ;;  %v3494_v2 = vld [vmem:[#allocation7 + $0x2b0] ss:$20 sps:$4 sm:$0xff]  }
  0xa5   :  { %1275 = vmatpush1.bf16.msra.mxu1 %v3446_v11  ;;  %v3500_v11 = vld [vmem:[#allocation7 + $0x2d8] ss:$20 sps:$4 sm:$0xff]  }
  0xa6   :  { %1276 = vmatprep.subr.bf16.mxu1 %v3454_v12  ;;  %v3505_v12 = vld [vmem:[#allocation7 + $0x2fc] ss:$20 sps:$4 sm:$0xff]  }
  0xa7   :  { %1191 = vmatpush1.bf16.msra.mxu0 %v3449_v5  ;;  %v3502_v5 = vld [vmem:[#allocation7 + $0x2dc] ss:$20 sps:$4 sm:$0xff]  }
  0xa8   :  { %1192 = vmatprep.subr.bf16.mxu0 %v3457_v6 }
  0xa9   :  { %1277 = vmatpush1.bf16.msra.mxu1 %v3452_v15  ;;  %v3503_v15 = vld [vmem:[#allocation7 + $0x2f8] ss:$20 sps:$4 sm:$0xff]  }
  0xaa   :  { %1278 = vmatprep.subr.bf16.mxu1 %v3460_v16  ;;  %v3506_v16 = vld [vmem:[#allocation7 + $0x300] ss:$20 sps:$4 sm:$0xff]  }
  0xab   :  { %1193 = vmatpush1.bf16.msra.mxu0 %v3455_v9 }
  0xac   :  { %1194 = vmatprep.subr.bf16.mxu0 %v3463_v10  ;;  %v3497_v10 = vld [vmem:[#allocation7 + $0x2d0] ss:$20 sps:$4 sm:$0xff]  }
  0xad   :  { %1279 = vmatpush1.bf16.msra.mxu1 %v3458_v18  ;;  %v3514_v18 = vld [vmem:[#allocation7 + $0x32c] ss:$20 sps:$4 sm:$0xff]  }
  0xae   :  { %1280 = vmatprep.subr.bf16.mxu1 %v3466_v19  ;;  %v3509_v19 = vld [vmem:[#allocation7 + $0x320] ss:$20 sps:$4 sm:$0xff]  }
  0xaf   :  { %1195 = vmatpush1.bf16.msra.mxu0 %v3461_v13  ;;  %v3508_v13 = vld [vmem:[#allocation7 + $0x304] ss:$20 sps:$4 sm:$0xff]  }
  0xb0   :  { %1196 = vmatprep.subr.bf16.mxu0 %v3469_v14 }
  0xb1   :  { %1281 = vmatpush1.bf16.msra.mxu1 %v3464_v20  ;;  %v3512_v20 = vld [vmem:[#allocation7 + $0x328] ss:$20 sps:$4 sm:$0xff]  }
  0xb2   :  { %1282 = vmatprep.subr.bf16.mxu1 %v3472_v21  ;;  %v3517_v21 = vld [vmem:[#allocation7 + $0x34c] ss:$20 sps:$4 sm:$0xff]  }
  0xb3   :  { %1197 = vmatpush1.bf16.msra.mxu0 %v3467_v17  ;;  %v3511_v17 = vld [vmem:[#allocation7 + $0x324] ss:$20 sps:$4 sm:$0xff]  }
  0xb4   :  { %1198 = vmatprep.subr.bf16.mxu0 %v3475_v23  ;;  %v3515_v23 = vld [vmem:[#allocation7 + $0x348] ss:$20 sps:$4 sm:$0xff]  }
  0xb5   :  { %1283 = vmatpush1.bf16.msra.mxu1 %v3470_v22  ;;  %v3520_v22 = vld [vmem:[#allocation7 + $0x354] ss:$20 sps:$4 sm:$0xff]  }
  0xb6   :  { %1284 = vmatprep.subr.bf16.mxu1 %v3478_v24  ;;  %v3518_v24 = vld [vmem:[#allocation7 + $0x350] ss:$20 sps:$4 sm:$0xff]  }
  0xb7   :  { %1199 = vmatpush1.bf16.msra.mxu0 %v3473_v25  ;;  %v3523_v25 = vld [vmem:[#allocation7 + $0x374] ss:$20 sps:$4 sm:$0xff]  }
  0xb8   :  { %1200 = vmatprep.subr.bf16.mxu0 %v3481_v27  ;;  %v3521_v27 = vld [vmem:[#allocation7 + $0x370] ss:$20 sps:$4 sm:$0xff]  }
  0xb9   :  { %1285 = vmatpush1.bf16.msra.mxu1 %v3476_v26  ;;  %v3526_v26 = vld [vmem:[#allocation7 + $0x37c] ss:$20 sps:$4 sm:$0xff]  }
  0xba   :  { %1286 = vmatprep.subr.bf16.mxu1 %v3484_v28  ;;  %v3524_v28 = vld [vmem:[#allocation7 + $0x378] ss:$20 sps:$4 sm:$0xff]  }
  0xbb   :  { %1201 = vmatpush1.bf16.msra.mxu0 %v3479_v29  ;;  %v3529_v29 = vld [vmem:[#allocation7 + $0x39c] ss:$20 sps:$4 sm:$0xff]  }
  0xbc   :  { %1213 = vmatprep.subr.bf16.mxu0 %v3487_v31  ;;  %v3527_v31 = vld [vmem:[#allocation7 + $0x398] ss:$20 sps:$4 sm:$0xff]  }
  0xbd   :  { %1287 = vmatpush1.bf16.msra.mxu1 %v3482_v30  ;;  %v3532_v30 = vld [vmem:[#allocation7 + $0x3a4] ss:$20 sps:$4 sm:$0xff]  }
  0xbe   :  { %1299 = vmatprep.subr.bf16.mxu1 %v3490_v32  ;;  %v3530_v32 = vld [vmem:[#allocation7 + $0x3a0] ss:$20 sps:$4 sm:$0xff]  }
 0x151   :  { %v316_v40 = vpop.f32.mrb[0].mxu0 }
 0x152   :  { %v317_v41 = vadd.f32 %v316_v40, %v142_v38  ;;  %v318_v42 = vpop.f32.mrb[1].mxu0  ;;  %v3537_v40 = vld [vmem:[#allocation7 + $0x38] ss:$20 sps:$4 sm:$0xff]  }
 0x153   :  { %v319_v43 = vadd.f32 %v318_v42, %v146_v39  ;;  %v320_v44 = vpop.f32.mrb[2].mxu0  ;;  %v359_v60 = vpop.f32.mrb[0].mxu1  ;;  %v3539_v42 = vld [vmem:[#allocation7 + $0x1a0] ss:$20 sps:$4 sm:$0xff]  }
 0x154   :  { %v321_v45 = vadd.f32 %v320_v44, %v142_v38  ;;  %v322_v46 = vpop.f32.mrb[3].mxu0  ;;  %v366_v49 = vmax.f32 %v317_v41, 0.0  ;;  %v360_v61 = vadd.f32 %v359_v60, %v150_v54  ;;  %v3250_v62 = vpop.f32.mrb[1].mxu1  ;;  %v3535_v38 = vld [vmem:[#allocation7 + $0x290] ss:$20 sps:$4 sm:$0xff]  }
 0x155   :  { %v323_v48 = vadd.f32 %v322_v46, %v146_v39  ;;  %v367_v51 = vmax.f32 %v319_v43, 0.0  ;;  %v362_v3 = vpop.f32.mrb[2].mxu1  ;;  %v3536_v39 = vld [vmem:[#allocation7 + $0x178] ss:$20 sps:$4 sm:$0xff]   ;;  %v3540_v43 = vld [vmem:[#allocation7 + $0x60] ss:$20 sps:$4 sm:$0xff]  }
 0x156   :  { %v369_v50 = vmax.f32 %v321_v45, 0.0  ;;  %v368_v6 = vmax.f32 %v360_v61, 0.0  ;;  %v363_v7 = vadd.f32 %v362_v3, %v150_v54  ;;  %v3251_v8 = vpop.f32.mrb[3].mxu1  ;;  %v3538_v41 = vld [vmem:[#allocation7 + $0x2b8] ss:$20 sps:$4 sm:$0xff]  }
 0x157   :  { %v370_v52 = vmax.f32 %v323_v48, 0.0  ;;  %v3541_v44 = vld [vmem:[#allocation7 + $0x2e0] ss:$20 sps:$4 sm:$0xff]   ;;  %v3542_v45 = vld [vmem:[#allocation7 + $0x1c8] ss:$20 sps:$4 sm:$0xff]  }
 0x158   :  { %v4038_v53 = vpack.c.bf16 %v369_v50, %v366_v49  ;;  %v371_v9 = vmax.f32 %v363_v7, 0.0  ;;  %v3543_v46 = vld [vmem:[#allocation7 + $0x88] ss:$20 sps:$4 sm:$0xff]   ;;  %v3545_v49 = vld [vmem:[#allocation7 + $0x1f0] ss:$20 sps:$4 sm:$0xff]  }
 0x159   :  { %v4041_v55 = vpack.c.bf16 %v370_v52, %v367_v51  ;;  %v3544_v48 = vld [vmem:[#allocation7 + $0x308] ss:$20 sps:$4 sm:$0xff]   ;;  %v3546_v50 = vld [vmem:[#allocation7 + $0xb0] ss:$20 sps:$4 sm:$0xff]   ;;  %v3548_v52 = vld [vmem:[#allocation7 + $0x218] ss:$20 sps:$4 sm:$0xff]  }
 0x15a   :  { %v4049_v14 = vpack.c.bf16 %v371_v9, %v368_v6  ;;  %v3547_v51 = vld [vmem:[#allocation7 + $0x330] ss:$20 sps:$4 sm:$0xff]   ;;  %v3549_v54 = vld [vmem:[#allocation7 + $0xd8] ss:$20 sps:$4 sm:$0xff]   ;;  %v3555_v60 = vld [vmem:[#allocation7 + $0x128] ss:$20 sps:$4 sm:$0xff]  }
 0x15b   :  { %1202 = vmatprep.mubr.bf16.mxu0 %v4041_v55  ;;  %1288 = vmatprep.mubr.bf16.mxu1 %v4041_v55  ;;  %v3556_v61 = vld [vmem:[#allocation7 + $0x3a8] ss:$20 sps:$4 sm:$0xff]   ;;  %v3559_v62 = vld [vmem:[#allocation8 + $0x4] ss:$12 sps:$4 sm:$0xff]   ;;  %v3565_v7 = vld [vmem:[#allocation8 + $0x34] ss:$12 sps:$4 sm:$0xff]  }
 0x15c   :  { %1203 = vmatmul.mubr.bf16.vlgmr.msra.gmra.mrb[4].mxu0 %v4038_v53  ;;  %1289 = vmatmul.mubr.bf16.vlgmr.msra.gmra.mrb[4].mxu1 %v4038_v53  ;;  %v3562_v3 = vld [vmem:[#allocation8 + $0x1c] ss:$12 sps:$4 sm:$0xff]   ;;  %v3560_v6 = vld [vmem:[#allocation8 + $0x18] ss:$12 sps:$4 sm:$0xff]   ;;  %v3590_v8 = vld [vmem:[#allocation8 + $0x20] ss:$12 sps:$4 sm:$0xff]  }
 0x15d   :  { %1214 = vmatpush1.bf16.msra.mxu0 %v3485_v56  ;;  %1300 = vmatpush1.bf16.msra.mxu1 %v3488_v57  ;;  %v3551_v56 = vld [vmem:[#allocation7 + $0x240] ss:$20 sps:$4 sm:$0xff]   ;;  %v3594_v9 = vld [vmem:[#allocation8 + $0xf8] ss:$12 sps:$4 sm:$0xff]  }
 0x15e   :  { %1215 = vmatprep.subr.bf16.mxu0 %v3493_v58  ;;  %1301 = vmatprep.subr.bf16.mxu1 %v3496_v59  ;;  %v3552_v57 = vld [vmem:[#allocation7 + $0x100] ss:$20 sps:$4 sm:$0xff]   ;;  %v3554_v59 = vld [vmem:[#allocation7 + $0x268] ss:$20 sps:$4 sm:$0xff]  }
 0x15f   :  { %1245 = vmatprep.mubr.bf16.mxu0 %v3895_v1  ;;  %1331 = vmatprep.mubr.bf16.mxu1 %v3895_v1  ;;  %v3553_v58 = vld [vmem:[#allocation7 + $0x380] ss:$20 sps:$4 sm:$0xff]  }
 0x161   :  { %1216 = vmatpush1.bf16.msra.mxu0 %v3491_v63  ;;  %1302 = vmatpush1.bf16.msra.mxu1 %v3494_v2  ;;  %v3584_v63 = vld [vmem:[#allocation8 + $0xc8] ss:$12 sps:$4 sm:$0xff]   ;;  %v3557_v2 = vld [vmem:[#allocation8] ss:$12 sps:$4 sm:$0xff]  }
 0x162   :  { %1217 = vmatprep.subr.bf16.mxu0 %v3499_v4  ;;  %1303 = vmatprep.subr.bf16.mxu1 %v3502_v5  ;;  %v3585_v4 = vld [vmem:[#allocation8 + $0x8] ss:$12 sps:$4 sm:$0xff]   ;;  %v3589_v5 = vld [vmem:[#allocation8 + $0xe0] ss:$12 sps:$4 sm:$0xff]  }
 0x165   :  { %1218 = vmatpush1.bf16.msra.mxu0 %v3497_v10  ;;  %1304 = vmatpush1.bf16.msra.mxu1 %v3500_v11  ;;  %v3563_v10 = vld [vmem:[#allocation8 + $0x30] ss:$12 sps:$4 sm:$0xff]   ;;  %v3568_v11 = vld [vmem:[#allocation8 + $0x4c] ss:$12 sps:$4 sm:$0xff]  }
 0x166   :  { %1219 = vmatprep.subr.bf16.mxu0 %v3505_v12  ;;  %1305 = vmatprep.subr.bf16.mxu1 %v3508_v13  ;;  %v3595_v12 = vld [vmem:[#allocation8 + $0x38] ss:$12 sps:$4 sm:$0xff]   ;;  %v3599_v13 = vld [vmem:[#allocation8 + $0x110] ss:$12 sps:$4 sm:$0xff]  }
 0x169   :  { %1220 = vmatpush1.bf16.msra.mxu0 %v3503_v15  ;;  %1306 = vmatpush1.bf16.msra.mxu1 %v3506_v16  ;;  %v3600_v15 = vld [vmem:[#allocation8 + $0x50] ss:$12 sps:$4 sm:$0xff]   ;;  %v3604_v16 = vld [vmem:[#allocation8 + $0x128] ss:$12 sps:$4 sm:$0xff]  }
 0x16a   :  { %1221 = vmatprep.subr.bf16.mxu0 %v3511_v17  ;;  %1307 = vmatprep.subr.bf16.mxu1 %v3514_v18  ;;  %v3569_v17 = vld [vmem:[#allocation8 + $0x60] ss:$12 sps:$4 sm:$0xff]   ;;  %v3574_v18 = vld [vmem:[#allocation8 + $0x7c] ss:$12 sps:$4 sm:$0xff]  }
 0x16d   :  { %1222 = vmatpush1.bf16.msra.mxu0 %v3509_v19  ;;  %1308 = vmatpush1.bf16.msra.mxu1 %v3512_v20  ;;  %v3605_v19 = vld [vmem:[#allocation8 + $0x68] ss:$12 sps:$4 sm:$0xff]   ;;  %v3609_v20 = vld [vmem:[#allocation8 + $0x140] ss:$12 sps:$4 sm:$0xff]  }
 0x16e   :  { %1223 = vmatprep.subr.bf16.mxu0 %v3517_v21  ;;  %1309 = vmatprep.subr.bf16.mxu1 %v3520_v22  ;;  %v3572_v21 = vld [vmem:[#allocation8 + $0x78] ss:$12 sps:$4 sm:$0xff]   ;;  %v3577_v22 = vld [vmem:[#allocation8 + $0x94] ss:$12 sps:$4 sm:$0xff]  }
 0x171   :  { %1224 = vmatpush1.bf16.msra.mxu0 %v3515_v23  ;;  %1310 = vmatpush1.bf16.msra.mxu1 %v3518_v24  ;;  %v3610_v23 = vld [vmem:[#allocation8 + $0x80] ss:$12 sps:$4 sm:$0xff]   ;;  %v3575_v24 = vld [vmem:[#allocation8 + $0x90] ss:$12 sps:$4 sm:$0xff]  }
 0x172   :  { %1225 = vmatprep.subr.bf16.mxu0 %v3523_v25  ;;  %1311 = vmatprep.subr.bf16.mxu1 %v3526_v26  ;;  %v3580_v25 = vld [vmem:[#allocation8 + $0xac] ss:$12 sps:$4 sm:$0xff]   ;;  %v3578_v26 = vld [vmem:[#allocation8 + $0xa8] ss:$12 sps:$4 sm:$0xff]  }
 0x175   :  { %1226 = vmatpush1.bf16.msra.mxu0 %v3521_v27  ;;  %1312 = vmatpush1.bf16.msra.mxu1 %v3524_v28  ;;  %v3583_v27 = vld [vmem:[#allocation8 + $0xc4] ss:$12 sps:$4 sm:$0xff]   ;;  %v3581_v28 = vld [vmem:[#allocation8 + $0xc0] ss:$12 sps:$4 sm:$0xff]  }
 0x176   :  { %1227 = vmatprep.subr.bf16.mxu0 %v3529_v29  ;;  %1313 = vmatprep.subr.bf16.mxu1 %v3532_v30  ;;  %v3588_v29 = vld [vmem:[#allocation8 + $0xdc] ss:$12 sps:$4 sm:$0xff]   ;;  %v3586_v30 = vld [vmem:[#allocation8 + $0xd8] ss:$12 sps:$4 sm:$0xff]  }
 0x179   :  { %1228 = vmatpush1.bf16.msra.mxu0 %v3527_v31  ;;  %1314 = vmatpush1.bf16.msra.mxu1 %v3530_v32  ;;  %v3593_v31 = vld [vmem:[#allocation8 + $0xf4] ss:$12 sps:$4 sm:$0xff]   ;;  %v3591_v32 = vld [vmem:[#allocation8 + $0xf0] ss:$12 sps:$4 sm:$0xff]  }
 0x17a   :  { %3117 = vmatprep.subr.bf16.mxu0 %v3533_v33  ;;  %3252 = vmatprep.subr.bf16.mxu1 %v3894_v0  ;;  %v3598_v33 = vld [vmem:[#allocation8 + $0x10c] ss:$12 sps:$4 sm:$0xff]  }
 0x17c   :  { %1246 = vmatmul.mubr.bf16.vlgmr.msra.gmra.mrb[4].mxu0 %v4049_v14  ;;  %1332 = vmatmul.mubr.bf16.vlgmr.msra.gmra.mrb[4].mxu1 %v4049_v14 }
 0x17d   :  { %3118 = vmatpush3.bf16.msra.mxu0 %v3534_v36  ;;  %1374 = vmatprep.mubr.bf16.mxu0 %v4041_v55  ;;  %v3550_v55 = vld [vmem:[#allocation7 + $0x358] ss:$20 sps:$4 sm:$0xff]   ;;  %v3596_v36 = vld [vmem:[#allocation8 + $0x108] ss:$12 sps:$4 sm:$0xff]  }
 0x17e   :  { %3253 = vmatpush3.bf16.msra.mxu1 %v3535_v38  ;;  %3119 = vmatprep.subr.bf16.mxu0 %v3536_v39  ;;  %v3603_v38 = vld [vmem:[#allocation8 + $0x124] ss:$12 sps:$4 sm:$0xff]   ;;  %v3601_v39 = vld [vmem:[#allocation8 + $0x120] ss:$12 sps:$4 sm:$0xff]  }
 0x17f   :  { %3254 = vmatprep.subr.bf16.mxu1 %v3894_v0  ;;  %3268 = vmatprep.mubr.msk.bf16.mxu1 %vm3896_vm0, %v3894_v0 }
 0x181   :  { %3120 = vmatpush3.bf16.msra.mxu0 %v3537_v40  ;;  %v3608_v40 = vld [vmem:[#allocation8 + $0x13c] ss:$12 sps:$4 sm:$0xff]  }
 0x182   :  { %3255 = vmatpush3.bf16.msra.mxu1 %v3538_v41  ;;  %3121 = vmatprep.subr.bf16.mxu0 %v3539_v42  ;;  %v3606_v41 = vld [vmem:[#allocation8 + $0x138] ss:$12 sps:$4 sm:$0xff]   ;;  %v3613_v42 = vld [vmem:[#allocation8 + $0x154] ss:$12 sps:$4 sm:$0xff]  }
 0x183   :  { %3256 = vmatprep.subr.bf16.mxu1 %v3894_v0 }
 0x185   :  { %3122 = vmatpush3.bf16.msra.mxu0 %v3540_v43  ;;  %v3614_v43 = vld [vmem:[#allocation8 + $0x158] ss:$12 sps:$4 sm:$0xff]  }
 0x186   :  { %3257 = vmatpush3.bf16.msra.mxu1 %v3541_v44  ;;  %3123 = vmatprep.subr.bf16.mxu0 %v3542_v45  ;;  %v3611_v44 = vld [vmem:[#allocation8 + $0x150] ss:$12 sps:$4 sm:$0xff]   ;;  %v3615_v45 = vld [vmem:[#allocation8 + $0x98] ss:$12 sps:$4 sm:$0xff]  }
 0x187   :  { %3258 = vmatprep.subr.bf16.mxu1 %v3894_v0 }
 0x189   :  { %3124 = vmatpush3.bf16.msra.mxu0 %v3543_v46  ;;  %v3618_v46 = vld [vmem:[#allocation8 + $0x16c] ss:$12 sps:$4 sm:$0xff]  }
 0x18a   :  { %3259 = vmatpush3.bf16.msra.mxu1 %v3544_v48  ;;  %3125 = vmatprep.subr.bf16.mxu0 %v3545_v49  ;;  %v3619_v48 = vld [vmem:[#allocation8 + $0x170] ss:$12 sps:$4 sm:$0xff]   ;;  %v3616_v49 = vld [vmem:[#allocation8 + $0x168] ss:$12 sps:$4 sm:$0xff]  }
 0x18b   :  { %3260 = vmatprep.subr.bf16.mxu1 %v3894_v0 }
 0x18d   :  { %3126 = vmatpush3.bf16.msra.mxu0 %v3546_v50  ;;  %v3620_v50 = vld [vmem:[#allocation8 + $0xb0] ss:$12 sps:$4 sm:$0xff]  }
 0x18e   :  { %3261 = vmatpush3.bf16.msra.mxu1 %v3547_v51  ;;  %3127 = vmatprep.subr.bf16.mxu0 %v3548_v52  ;;  %v3623_v51 = vld [vmem:[#allocation8 + $0x184] ss:$12 sps:$4 sm:$0xff]   ;;  %v3624_v52 = vld [vmem:[#allocation8 + $0x248] ss:$12 sps:$4 sm:$0xff]  }
 0x18f   :  { %3262 = vmatprep.subr.bf16.mxu1 %v3894_v0 }
 0x191   :  { %3128 = vmatpush3.bf16.msra.mxu0 %v3549_v54  ;;  %v4069_v54 = vld [vmem:[%s4138_s4] sm:$0x1f] }
 0x192   :  { %3263 = vmatpush3.bf16.msra.mxu1 %v3550_v55  ;;  %3129 = vmatprep.subr.bf16.mxu0 %v3551_v56  ;;  %v535_v55 = vsub.s32 3, %v4022_v34  ;;  %v524_v56 = vrot.slane %v4069_v54, %v4025_v35 }
 0x193   :  { %3264 = vmatprep.subr.bf16.mxu1 %v3894_v0 }
 0x195   :  { %3130 = vmatpush3.bf16.msra.mxu0 %v3552_v57  ;;  %v532_v57 = vrot.slane %v4069_v54, %v4036_v47 }
 0x196   :  { %3265 = vmatpush3.bf16.msra.mxu1 %v3553_v58  ;;  %3131 = vmatprep.subr.bf16.mxu0 %v3554_v59  ;;  %v528_v58 = vrot.slane %v4069_v54, %v4031_v37  ;;  %v536_v59 = vrot.slane %v4069_v54, %v535_v55  ;;  %v3654_v55 = vld [vmem:[#allocation8 + $0x2d8] ss:$12 sps:$4 sm:$0xff]  }
 0x197   :  { %3266 = vmatprep.subr.bf16.mxu1 %v3894_v0 }
 0x199   :  { %3132 = vmatpush3.bf16.msra.mxu0 %v3555_v60 }
 0x19a   :  { %3267 = vmatpush3.bf16.msra.mxu1 %v3556_v61  ;;  %2256 = vmatprep.subr.bf16.mxu0 %v3559_v62 }
 0x19b   :  { %3148 = vmatprep.subr.bf16.mxu1 %v3584_v63 }
 0x19c   :  { %1375 = vmatmul.mubr.bf16.vlgmr.msra.gmra.mrb[8].mxu0 %v4038_v53  ;;  %v3566_v53 = vld [vmem:[#allocation8 + $0x48] ss:$12 sps:$4 sm:$0xff]  }
 0x19d   :  { %3269 = vmatmul.mubr.bf16.vlgmr.msra.gmra.mrb[8].mxu1 %v4049_v14  ;;  %2257 = vmatpush1.bf16.msra.mxu0 %v3557_v2  ;;  %v3571_v14 = vld [vmem:[#allocation8 + $0x64] ss:$12 sps:$4 sm:$0xff]  }
 0x19e   :  { %2258 = vmatprep.subr.bf16.mxu0 %v3562_v3  ;;  %3149 = vmatpush3.bf16.msra.mxu1 %v3585_v4 }
 0x19f   :  { %3150 = vmatprep.subr.bf16.mxu1 %v3589_v5 }
 0x1a1   :  { %2259 = vmatpush1.bf16.msra.mxu0 %v3560_v6 }
 0x1a2   :  { %2260 = vmatprep.subr.bf16.mxu0 %v3565_v7  ;;  %3151 = vmatpush3.bf16.msra.mxu1 %v3590_v8 }
 0x1a3   :  { %3152 = vmatprep.subr.bf16.mxu1 %v3594_v9 }
 0x1a5   :  { %2261 = vmatpush1.bf16.msra.mxu0 %v3563_v10 }
 0x1a6   :  { %2262 = vmatprep.subr.bf16.mxu0 %v3568_v11  ;;  %3153 = vmatpush3.bf16.msra.mxu1 %v3595_v12 }
 0x1a7   :  { %3154 = vmatprep.subr.bf16.mxu1 %v3599_v13 }
 0x1a9   :  { %2263 = vmatpush1.bf16.msra.mxu0 %v3566_v53 }
 0x1aa   :  { %2264 = vmatprep.subr.bf16.mxu0 %v3571_v14  ;;  %3155 = vmatpush3.bf16.msra.mxu1 %v3600_v15 }
 0x1ab   :  { %3156 = vmatprep.subr.bf16.mxu1 %v3604_v16 }
 0x1ad   :  { %2265 = vmatpush1.bf16.msra.mxu0 %v3569_v17 }
 0x1ae   :  { %2266 = vmatprep.subr.bf16.mxu0 %v3574_v18  ;;  %3157 = vmatpush3.bf16.msra.mxu1 %v3605_v19 }
 0x1af   :  { %3158 = vmatprep.subr.bf16.mxu1 %v3609_v20 }
 0x1b1   :  { %2267 = vmatpush1.bf16.msra.mxu0 %v3572_v21 }
 0x1b2   :  { %2268 = vmatprep.subr.bf16.mxu0 %v3577_v22  ;;  %3159 = vmatpush3.bf16.msra.mxu1 %v3610_v23 }
 0x1b3   :  { %3160 = vmatprep.subr.bf16.mxu1 %v3614_v43  ;;  %v3644_v43 = vld [vmem:[#allocation8 + $0x2a8] ss:$12 sps:$4 sm:$0xff]  }
 0x1b5   :  { %2269 = vmatpush1.bf16.msra.mxu0 %v3575_v24 }
 0x1b6   :  { %2270 = vmatprep.subr.bf16.mxu0 %v3580_v25  ;;  %3161 = vmatpush3.bf16.msra.mxu1 %v3615_v45  ;;  %v3621_v25 = vld [vmem:[#allocation8 + $0x180] ss:$12 sps:$4 sm:$0xff]   ;;  %v3645_v45 = vld [vmem:[#allocation8 + $0x1e8] ss:$12 sps:$4 sm:$0xff]  }
 0x1b7   :  { %3162 = vmatprep.subr.bf16.mxu1 %v3619_v48  ;;  %v3649_v48 = vld [vmem:[#allocation8 + $0x2c0] ss:$12 sps:$4 sm:$0xff]  }
 0x1b9   :  { %2271 = vmatpush1.bf16.msra.mxu0 %v3578_v26  ;;  %v3625_v26 = vld [vmem:[#allocation8 + $0x188] ss:$12 sps:$4 sm:$0xff]  }
 0x1ba   :  { %2272 = vmatprep.subr.bf16.mxu0 %v3583_v27  ;;  %3163 = vmatpush3.bf16.msra.mxu1 %v3620_v50  ;;  %v3628_v27 = vld [vmem:[#allocation8 + $0x19c] ss:$12 sps:$4 sm:$0xff]   ;;  %v3650_v50 = vld [vmem:[#allocation8 + $0x200] ss:$12 sps:$4 sm:$0xff]  }
 0x1bb   :  { %3170 = vmatprep.subr.bf16.mxu1 %v3624_v52  ;;  %v3653_v52 = vld [vmem:[#allocation8 + $0x214] ss:$12 sps:$4 sm:$0xff]  }
 0x1bd   :  { %2273 = vmatpush1.bf16.msra.mxu0 %v3581_v28  ;;  %v3629_v28 = vld [vmem:[#allocation8 + $0x260] ss:$12 sps:$4 sm:$0xff]  }
 0x1be   :  { %2274 = vmatprep.subr.bf16.mxu0 %v3588_v29  ;;  %v3626_v29 = vld [vmem:[#allocation8 + $0x198] ss:$12 sps:$4 sm:$0xff]  }
 0x1c1   :  { %2275 = vmatpush1.bf16.msra.mxu0 %v3586_v30  ;;  %v3630_v30 = vld [vmem:[#allocation8 + $0x1a0] ss:$12 sps:$4 sm:$0xff]  }
 0x1c2   :  { %2276 = vmatprep.subr.bf16.mxu0 %v3593_v31  ;;  %v3633_v31 = vld [vmem:[#allocation8 + $0x1b4] ss:$12 sps:$4 sm:$0xff]  }
 0x1c5   :  { %2277 = vmatpush1.bf16.msra.mxu0 %v3591_v32  ;;  %v3634_v32 = vld [vmem:[#allocation8 + $0x278] ss:$12 sps:$4 sm:$0xff]  }
 0x1c6   :  { %2278 = vmatprep.subr.bf16.mxu0 %v3598_v33  ;;  %v3631_v33 = vld [vmem:[#allocation8 + $0x1b0] ss:$12 sps:$4 sm:$0xff]  }
 0x1c9   :  { %2279 = vmatpush1.bf16.msra.mxu0 %v3596_v36  ;;  %v3635_v36 = vld [vmem:[#allocation8 + $0x1b8] ss:$12 sps:$4 sm:$0xff]  }
 0x1ca   :  { %2280 = vmatprep.subr.bf16.mxu0 %v3603_v38  ;;  %v3638_v38 = vld [vmem:[#allocation8 + $0x1cc] ss:$12 sps:$4 sm:$0xff]  }
 0x1cd   :  { %2281 = vmatpush1.bf16.msra.mxu0 %v3601_v39  ;;  %v3639_v39 = vld [vmem:[#allocation8 + $0x290] ss:$12 sps:$4 sm:$0xff]  }
 0x1ce   :  { %2282 = vmatprep.subr.bf16.mxu0 %v3608_v40  ;;  %v3636_v40 = vld [vmem:[#allocation8 + $0x1c8] ss:$12 sps:$4 sm:$0xff]  }
 0x1d1   :  { %2283 = vmatpush1.bf16.msra.mxu0 %v3606_v41  ;;  %v3640_v41 = vld [vmem:[#allocation8 + $0x1d0] ss:$12 sps:$4 sm:$0xff]  }
 0x1d2   :  { %2284 = vmatprep.subr.bf16.mxu0 %v3613_v42  ;;  %v3643_v42 = vld [vmem:[#allocation8 + $0x1e4] ss:$12 sps:$4 sm:$0xff]  }
 0x1d5   :  { %2285 = vmatpush1.bf16.msra.mxu0 %v3611_v44  ;;  %v3641_v44 = vld [vmem:[#allocation8 + $0x1e0] ss:$12 sps:$4 sm:$0xff]  }
 0x1d6   :  { %2286 = vmatprep.subr.bf16.mxu0 %v3618_v46  ;;  %v3648_v46 = vld [vmem:[#allocation8 + $0x1fc] ss:$12 sps:$4 sm:$0xff]  }
 0x1d9   :  { %2287 = vmatpush1.bf16.msra.mxu0 %v3616_v49  ;;  %v3646_v49 = vld [vmem:[#allocation8 + $0x1f8] ss:$12 sps:$4 sm:$0xff]  }
 0x1da   :  { %2299 = vmatprep.subr.bf16.mxu0 %v3623_v51  ;;  %v539_v51 = vsub.s32 4, %v4022_v34 }
 0x24f   :  { %v1247_v60 = vpop.f32.mrb[4].mxu0  ;;  %v1333_v61 = vpop.f32.mrb[4].mxu1 }
 0x250   :  { %v3312_v62 = vadd.f32 %v1247_v60, %v524_v56  ;;  %v3316_v63 = vadd.f32 %v1333_v61, %v532_v57  ;;  %v1249_v2 = vpop.f32.mrb[5].mxu0  ;;  %v1335_v3 = vpop.f32.mrb[5].mxu1 }
 0x251   :  { %v3313_v4 = vadd.f32 %v1249_v2, %v528_v58  ;;  %v3317_v5 = vadd.f32 %v1335_v3, %v536_v59  ;;  %v1251_v6 = vpop.f32.mrb[6].mxu0  ;;  %v1337_v7 = vpop.f32.mrb[6].mxu1 }
 0x252   :  { %v3314_v8 = vadd.f32 %v1251_v6, %v524_v56  ;;  %v3318_v9 = vadd.f32 %v1337_v7, %v532_v57  ;;  %v1253_v10 = vpop.f32.mrb[7].mxu0  ;;  %v1339_v11 = vpop.f32.mrb[7].mxu1  ;;  %v1424_v53 = vmax.f32 %v3312_v62, 0.0  ;;  %v1426_v14 = vmax.f32 %v3316_v63, 0.0  ;;  %v3658_v62 = vld [vmem:[#allocation8 + $0x22c] ss:$12 sps:$4 sm:$0xff]  }
 0x253   :  { %v3315_v12 = vadd.f32 %v1253_v10, %v528_v58  ;;  %v3319_v13 = vadd.f32 %v1339_v11, %v536_v59  ;;  %v1425_v17 = vmax.f32 %v3313_v4, 0.0  ;;  %v1427_v18 = vmax.f32 %v3317_v5, 0.0  ;;  %v3651_v58 = vld [vmem:[#allocation8 + $0x210] ss:$12 sps:$4 sm:$0xff]   ;;  %v3655_v59 = vld [vmem:[#allocation8 + $0x218] ss:$12 sps:$4 sm:$0xff]  }
 0x254   :  { %v1429_v15 = vmax.f32 %v3314_v8, 0.0  ;;  %v1431_v16 = vmax.f32 %v3318_v9, 0.0  ;;  %v540_v57 = vrot.slane %v4069_v54, %v539_v51  ;;  %v3659_v63 = vld [vmem:[#allocation8 + $0x2f0] ss:$12 sps:$4 sm:$0xff]   ;;  %v3656_v9 = vld [vmem:[#allocation8 + $0x228] ss:$12 sps:$4 sm:$0xff]  }
 0x255   :  { %v1430_v19 = vmax.f32 %v3315_v12, 0.0  ;;  %v1432_v20 = vmax.f32 %v3319_v13, 0.0  ;;  %v3660_v54 = vld [vmem:[#allocation8 + $0x230] ss:$12 sps:$4 sm:$0xff]   ;;  %v3702_v51 = vld [vmem:[#allocation8 + $0x348] ss:$12 sps:$4 sm:$0xff]  }
 0x256   :  { %v1434_v21 = vpack.c.bf16 %v1429_v15, %v1424_v53  ;;  %v4079_v22 = vpack.c.bf16 %v1431_v16, %v1426_v14  ;;  %v3663_v10 = vld [vmem:[#allocation8 + $0x244] ss:$12 sps:$4 sm:$0xff]   ;;  %v3661_v53 = vld [vmem:[#allocation8 + $0x240] ss:$12 sps:$4 sm:$0xff]   ;;  %v3664_v14 = vld [vmem:[#allocation8 + $0x308] ss:$12 sps:$4 sm:$0xff]  }
 0x257   :  { %v1435_v23 = vpack.c.bf16 %v1430_v19, %v1425_v17  ;;  %v1437_v24 = vpack.c.bf16 %v1432_v20, %v1427_v18  ;;  %v3667_v15 = vld [vmem:[#allocation8 + $0x25c] ss:$12 sps:$4 sm:$0xff]   ;;  %v3665_v19 = vld [vmem:[#allocation8 + $0x258] ss:$12 sps:$4 sm:$0xff]   ;;  %v3668_v20 = vld [vmem:[#allocation8 + $0x320] ss:$12 sps:$4 sm:$0xff]  }
 0x259   :  { %2288 = vmatprep.mubr.bf16.mxu0 %v1435_v23  ;;  %2417 = vmatprep.mubr.bf16.mxu1 %v1435_v23  ;;  %v3669_v23 = vld [vmem:[#allocation8 + $0x270] ss:$12 sps:$4 sm:$0xff]  }
 0x25a   :  { %2289 = vmatmul.mubr.bf16.vlgmr.msra.gmra.mrb[12].mxu0 %v1434_v21  ;;  %2418 = vmatmul.mubr.bf16.vlgmr.msra.gmra.mrb[12].mxu1 %v1434_v21  ;;  %v3671_v21 = vld [vmem:[#allocation8 + $0x274] ss:$12 sps:$4 sm:$0xff]  }
 0x25b   :  { %2300 = vmatpush1.bf16.msra.mxu0 %v3621_v25  ;;  %3171 = vmatpush3.bf16.msra.mxu1 %v3625_v26  ;;  %v3675_v25 = vld [vmem:[#allocation8 + $0x28c] ss:$12 sps:$4 sm:$0xff]   ;;  %v3673_v26 = vld [vmem:[#allocation8 + $0x288] ss:$12 sps:$4 sm:$0xff]  }
 0x25c   :  { %2331 = vmatprep.mubr.bf16.mxu0 %v1437_v24  ;;  %2458 = vmatprep.mubr.bf16.mxu1 %v1437_v24  ;;  %v3672_v24 = vld [vmem:[#allocation8 + $0x338] ss:$12 sps:$4 sm:$0xff]  }
 0x25d   :  { %2301 = vmatprep.subr.bf16.mxu0 %v3628_v27  ;;  %3172 = vmatprep.subr.bf16.mxu1 %v3629_v28  ;;  %v3676_v27 = vld [vmem:[#allocation8 + $0x350] ss:$12 sps:$4 sm:$0xff]  }
 0x25e   :  { %v3679_v28 = vld [vmem:[#allocation8 + $0x2a4] ss:$12 sps:$4 sm:$0xff]  }
 0x25f   :  { %2302 = vmatpush1.bf16.msra.mxu0 %v3626_v29  ;;  %3173 = vmatpush3.bf16.msra.mxu1 %v3630_v30  ;;  %v3677_v29 = vld [vmem:[#allocation8 + $0x2a0] ss:$12 sps:$4 sm:$0xff]   ;;  %v3680_v30 = vld [vmem:[#allocation8 + $0x368] ss:$12 sps:$4 sm:$0xff]  }
 0x260   :  { %2303 = vmatprep.subr.bf16.mxu0 %v3633_v31  ;;  %3174 = vmatprep.subr.bf16.mxu1 %v3634_v32  ;;  %v3683_v31 = vld [vmem:[#allocation8 + $0x2bc] ss:$12 sps:$4 sm:$0xff]   ;;  %v3681_v32 = vld [vmem:[#allocation8 + $0x2b8] ss:$12 sps:$4 sm:$0xff]  }
 0x263   :  { %2304 = vmatpush1.bf16.msra.mxu0 %v3631_v33  ;;  %3175 = vmatpush3.bf16.msra.mxu1 %v3635_v36  ;;  %v3684_v33 = vld [vmem:[#allocation8 + $0x380] ss:$12 sps:$4 sm:$0xff]  }
 0x264   :  { %2305 = vmatprep.subr.bf16.mxu0 %v3638_v38  ;;  %3176 = vmatprep.subr.bf16.mxu1 %v3639_v39  ;;  %v3687_v36 = vld [vmem:[#allocation8 + $0x2d4] ss:$12 sps:$4 sm:$0xff]   ;;  %v3685_v38 = vld [vmem:[#allocation8 + $0x2d0] ss:$12 sps:$4 sm:$0xff]   ;;  %v3688_v39 = vld [vmem:[#allocation8 + $0x398] ss:$12 sps:$4 sm:$0xff]  }
 0x267   :  { %2306 = vmatpush1.bf16.msra.mxu0 %v3636_v40  ;;  %3177 = vmatpush3.bf16.msra.mxu1 %v3640_v41  ;;  %v3691_v40 = vld [vmem:[#allocation8 + $0x2ec] ss:$12 sps:$4 sm:$0xff]   ;;  %v3689_v41 = vld [vmem:[#allocation8 + $0x2e8] ss:$12 sps:$4 sm:$0xff]  }
 0x268   :  { %2307 = vmatprep.subr.bf16.mxu0 %v3643_v42  ;;  %3178 = vmatprep.subr.bf16.mxu1 %v3644_v43  ;;  %v3692_v42 = vld [vmem:[#allocation8 + $0x3b0] ss:$12 sps:$4 sm:$0xff]  }
 0x269   :  { %v3695_v43 = vld [vmem:[#allocation8 + $0x304] ss:$12 sps:$4 sm:$0xff]  }
 0x26b   :  { %2308 = vmatpush1.bf16.msra.mxu0 %v3641_v44  ;;  %3179 = vmatpush3.bf16.msra.mxu1 %v3645_v45  ;;  %v3693_v44 = vld [vmem:[#allocation8 + $0x300] ss:$12 sps:$4 sm:$0xff]   ;;  %v3698_v45 = vld [vmem:[#allocation8 + $0x31c] ss:$12 sps:$4 sm:$0xff]  }
 0x26c   :  { %2309 = vmatprep.subr.bf16.mxu0 %v3648_v46  ;;  %3180 = vmatprep.subr.bf16.mxu1 %v3649_v48  ;;  %v3696_v46 = vld [vmem:[#allocation8 + $0x318] ss:$12 sps:$4 sm:$0xff]   ;;  %v3701_v48 = vld [vmem:[#allocation8 + $0x334] ss:$12 sps:$4 sm:$0xff]  }
 0x26f   :  { %2310 = vmatpush1.bf16.msra.mxu0 %v3646_v49  ;;  %3181 = vmatpush3.bf16.msra.mxu1 %v3650_v50  ;;  %v3133_v56 = vpop.f32.mrb[8].mxu0  ;;  %v3699_v49 = vld [vmem:[#allocation8 + $0x330] ss:$12 sps:$4 sm:$0xff]   ;;  %v3704_v50 = vld [vmem:[#allocation8 + $0x34c] ss:$12 sps:$4 sm:$0xff]  }
 0x270   :  { %v1417_v60 = vpop.f32.mrb[8].mxu1  ;;  %v3134_v61 = vpop.f32.mrb[9].mxu0  ;;  %2311 = vmatprep.subr.bf16.mxu0 %v3653_v52  ;;  %3182 = vmatprep.subr.bf16.mxu1 %v3654_v55  ;;  %v3707_v52 = vld [vmem:[#allocation8 + $0x364] ss:$12 sps:$4 sm:$0xff]   ;;  %v3705_v55 = vld [vmem:[#allocation8 + $0x360] ss:$12 sps:$4 sm:$0xff]  }
 0x271   :  { %v3135_v2 = vadd.f32 %v3134_v61, %v3133_v56  ;;  %v3270_v3 = vpop.f32.mrb[9].mxu1  ;;  %v3136_v34 = vpop.f32.mrb[10].mxu0  ;;  %v3708_v56 = vld [vmem:[#allocation8 + $0x378] ss:$12 sps:$4 sm:$0xff]  }
 0x272   :  { %v1420_v4 = vpop.f32.mrb[10].mxu1  ;;  %v3137_v5 = vpop.f32.mrb[11].mxu0  ;;  %v3718_v61 = vld [vmem:[#allocation10] sm:$0xff]   ;;  %v3722_v3 = vld [vmem:[#allocation10 + $0x10] sm:$0xff]  }
 0x273   :  { %v1377_v6 = vadd.f32 %v3135_v2, %v540_v57  ;;  %v3138_v7 = vadd.f32 %v3137_v5, %v3136_v34  ;;  %v3271_v8 = vpop.f32.mrb[11].mxu1  ;;  %2312 = vmatpush1.bf16.msra.mxu0 %v3651_v58  ;;  %3183 = vmatpush3.bf16.msra.mxu1 %v3655_v59  ;;  %v3716_v58 = vld [vmem:[#allocation8 + $0x3ac] ss:$12 sps:$4 sm:$0xff]   ;;  %v3714_v59 = vld [vmem:[#allocation8 + $0x3a8] ss:$12 sps:$4 sm:$0xff]   ;;  %v3725_v5 = vld [vmem:[#allocation10 + $0x60] sm:$0xff]  }
 0x274   :  { %2313 = vmatprep.subr.bf16.mxu0 %v3658_v62  ;;  %3184 = vmatprep.subr.bf16.mxu1 %v3659_v63  ;;  %v3719_v62 = vld [vmem:[#allocation10 + $0x48] sm:$0xff]   ;;  %v3721_v2 = vld [vmem:[#allocation10 + $0x50] sm:$0xff]   ;;  %v3723_v34 = vld [vmem:[#allocation10 + $0x58] sm:$0xff]  }
 0x275   :  { %v1418_v11 = vadd.f32 %v1417_v60, %v1377_v6  ;;  %v1380_v12 = vadd.f32 %v3138_v7, %v540_v57  ;;  %v3713_v57 = vld [vmem:[#allocation8 + $0x394] ss:$12 sps:$4 sm:$0xff]   ;;  %v3720_v63 = vld [vmem:[#allocation10 + $0x8] sm:$0xff]  }
 0x276   :  { %v3717_v60 = vld [vmem:[#allocation10 + $0x40] sm:$0xff]   ;;  %v3727_v7 = vld [vmem:[#allocation10 + $0x68] sm:$0xff]  }
 0x277   :  { %v1421_v13 = vadd.f32 %v1420_v4, %v1380_v12  ;;  %2314 = vmatpush1.bf16.msra.mxu0 %v3656_v9  ;;  %3185 = vmatpush3.bf16.msra.mxu1 %v3660_v54  ;;  %v1428_v16 = vmax.f32 %v1418_v11, 0.0  ;;  %v3724_v4 = vld [vmem:[#allocation10 + $0x18] sm:$0xff]   ;;  %v3726_v6 = vld [vmem:[#allocation10 + $0x20] sm:$0xff]   ;;  %v3728_v8 = vld [vmem:[#allocation10 + $0x28] sm:$0xff]  }
 0x278   :  { %2315 = vmatprep.subr.bf16.mxu0 %v3663_v10  ;;  %3272 = vmatprep.subr.bf16.mxu1 %v3894_v0  ;;  %v3729_v9 = vld [vmem:[#allocation10 + $0x70] sm:$0xff]   ;;  %v3731_v10 = vld [vmem:[#allocation10 + $0x78] sm:$0xff]  }
 0x279   :  { %v1433_v17 = vmax.f32 %v1421_v13, 0.0  ;;  %v3730_v54 = vld [vmem:[#allocation10 + $0x30] sm:$0xff]   ;;  %v3732_v11 = vld [vmem:[#allocation10 + $0x38] sm:$0xff]  }
 0x27a   :  { %2459 = vmatmul.mubr.bf16.vlgmr.msra.gmra.mrb[16].mxu1 %v4079_v22 }
 0x27b   :  { %v4085_v18 = vpack.c.bf16 %v1433_v17, %v1428_v16  ;;  %2316 = vmatpush1.bf16.msra.mxu0 %v3661_v53  ;;  %3273 = vmatpush3.bf16.msra.mxu1 %v3664_v14  ;;  %v1599_v17 = vld [vmem:[%s4140_s6] sm:$0x7] }
 0x27c   :  { %2317 = vmatprep.subr.bf16.mxu0 %v3667_v15  ;;  %3274 = vmatprep.subr.bf16.mxu1 %v3894_v0 }
 0x27d   :  { %3288 = vmatprep.mubr.msk.bf16.mxu1 %vm3896_vm0, %v3894_v0 }
 0x27f   :  { %2318 = vmatpush1.bf16.msra.mxu0 %v3665_v19  ;;  %3275 = vmatpush3.bf16.msra.mxu1 %v3668_v20 }
 0x280   :  { %2319 = vmatprep.subr.bf16.mxu0 %v3671_v21  ;;  %3276 = vmatprep.subr.bf16.mxu1 %v3894_v0 }
 0x283   :  { %2320 = vmatpush1.bf16.msra.mxu0 %v3669_v23  ;;  %3277 = vmatpush3.bf16.msra.mxu1 %v3672_v24 }
 0x284   :  { %2321 = vmatprep.subr.bf16.mxu0 %v3675_v25  ;;  %3278 = vmatprep.subr.bf16.mxu1 %v3894_v0 }
 0x287   :  { %2322 = vmatpush1.bf16.msra.mxu0 %v3673_v26  ;;  %3279 = vmatpush3.bf16.msra.mxu1 %v3676_v27 }
 0x288   :  { %2323 = vmatprep.subr.bf16.mxu0 %v3679_v28  ;;  %3280 = vmatprep.subr.bf16.mxu1 %v3894_v0 }
 0x28b   :  { %2324 = vmatpush1.bf16.msra.mxu0 %v3677_v29  ;;  %3281 = vmatpush3.bf16.msra.mxu1 %v3680_v30 }
 0x28c   :  { %2325 = vmatprep.subr.bf16.mxu0 %v3683_v31  ;;  %3282 = vmatprep.subr.bf16.mxu1 %v3894_v0 }
 0x28f   :  { %2326 = vmatpush1.bf16.msra.mxu0 %v3681_v32  ;;  %3283 = vmatpush3.bf16.msra.mxu1 %v3684_v33 }
 0x290   :  { %2327 = vmatprep.subr.bf16.mxu0 %v3687_v36  ;;  %3284 = vmatprep.subr.bf16.mxu1 %v3894_v0 }
 0x293   :  { %2328 = vmatpush1.bf16.msra.mxu0 %v3685_v38  ;;  %3285 = vmatpush3.bf16.msra.mxu1 %v3688_v39 }
 0x294   :  { %2329 = vmatprep.subr.bf16.mxu0 %v3691_v40  ;;  %3286 = vmatprep.subr.bf16.mxu1 %v3894_v0 }
 0x297   :  { %2330 = vmatpush1.bf16.msra.mxu0 %v3689_v41  ;;  %3287 = vmatpush3.bf16.msra.mxu1 %v3692_v42  ;;  %v1608_v42 = vrot.slane %v1599_v17, %v4031_v37  ;;  %v3735_v37 = vld [vmem:[#allocation10 + $0x90] sm:$0xff]  }
 0x298   :  { %2342 = vmatprep.subr.bf16.mxu0 %v3695_v43  ;;  %3201 = vmatprep.subr.bf16.mxu1 %v3717_v60  ;;  %v3737_v60 = vld [vmem:[#allocation10 + $0xa0] sm:$0xff]  }
 0x29a   :  { %2332 = vmatmul.mubr.bf16.vlgmr.msra.gmra.mrb[12].mxu0 %v4079_v22  ;;  %3289 = vmatmul.mubr.bf16.vlgmr.msra.gmra.mrb[20].mxu1 %v4085_v18  ;;  %v3710_v22 = vld [vmem:[#allocation8 + $0x37c] ss:$12 sps:$4 sm:$0xff]  }
 0x29b   :  { %2343 = vmatpush1.bf16.msra.mxu0 %v3693_v44  ;;  %2374 = vmatprep.mubr.bf16.mxu0 %v3895_v1  ;;  %v3711_v1 = vld [vmem:[#allocation8 + $0x390] ss:$12 sps:$4 sm:$0xff]  }
 0x29c   :  { %2344 = vmatprep.subr.bf16.mxu0 %v3698_v45  ;;  %3202 = vmatpush3.bf16.msra.mxu1 %v3718_v61  ;;  %v3738_v61 = vld [vmem:[#allocation10 + $0xa8] sm:$0xff]  }
 0x29d   :  { %3203 = vmatprep.subr.bf16.mxu1 %v3719_v62  ;;  %v3739_v62 = vld [vmem:[#allocation10 + $0xb0] sm:$0xff]  }
 0x29f   :  { %2345 = vmatpush1.bf16.msra.mxu0 %v3696_v46 }
 0x2a0   :  { %2346 = vmatprep.subr.bf16.mxu0 %v3701_v48  ;;  %3204 = vmatpush3.bf16.msra.mxu1 %v3720_v63  ;;  %v3740_v63 = vld [vmem:[#allocation10 + $0xb8] sm:$0xff]  }
 0x2a1   :  { %3205 = vmatprep.subr.bf16.mxu1 %v3721_v2 }
 0x2a3   :  { %2347 = vmatpush1.bf16.msra.mxu0 %v3699_v49 }
 0x2a4   :  { %2348 = vmatprep.subr.bf16.mxu0 %v3704_v50  ;;  %3206 = vmatpush3.bf16.msra.mxu1 %v3722_v3 }
 0x2a5   :  { %3207 = vmatprep.subr.bf16.mxu1 %v3723_v34 }
 0x2a7   :  { %2349 = vmatpush1.bf16.msra.mxu0 %v3702_v51 }
 0x2a8   :  { %2350 = vmatprep.subr.bf16.mxu0 %v3707_v52  ;;  %3208 = vmatpush3.bf16.msra.mxu1 %v3724_v4 }
 0x2a9   :  { %3209 = vmatprep.subr.bf16.mxu1 %v3725_v5 }
 0x2ab   :  { %2351 = vmatpush1.bf16.msra.mxu0 %v3705_v55 }
 0x2ac   :  { %2352 = vmatprep.subr.bf16.mxu0 %v3710_v22  ;;  %3210 = vmatpush3.bf16.msra.mxu1 %v3726_v6 }
 0x2ad   :  { %3211 = vmatprep.subr.bf16.mxu1 %v3727_v7  ;;  %v3083_v7 = vld [vmem:[%s4142_s8] ss:$0 sm:$0xff] }
 0x2af   :  { %2353 = vmatpush1.bf16.msra.mxu0 %v3708_v56 }
 0x2b0   :  { %2354 = vmatprep.subr.bf16.mxu0 %v3713_v57  ;;  %3212 = vmatpush3.bf16.msra.mxu1 %v3728_v8 }
 0x2b1   :  { %3213 = vmatprep.subr.bf16.mxu1 %v3729_v9 }
 0x2b3   :  { %2355 = vmatpush1.bf16.msra.mxu0 %v3711_v1 }
 0x2b4   :  { %2356 = vmatprep.subr.bf16.mxu0 %v3716_v58  ;;  %3214 = vmatpush3.bf16.msra.mxu1 %v3730_v54  ;;  %v3733_v58 = vld [vmem:[#allocation10 + $0x80] sm:$0xff]  }
 0x2b5   :  { %3215 = vmatprep.subr.bf16.mxu1 %v3731_v10 }
 0x2b7   :  { %2357 = vmatpush1.bf16.msra.mxu0 %v3714_v59  ;;  %v3736_v59 = vld [vmem:[#allocation10 + $0x98] sm:$0xff]  }
 0x2b8   :  { %3216 = vmatpush3.bf16.msra.mxu1 %v3732_v11 }
 0x2b9   :  { %3292 = vmatprep.subr.bf16.mxu1 %v3894_v0 }
 0x2ba   :  { %2375 = vmatmul.mubr.bf16.vlgmr.msra.gmra.mrb[12].mxu0 %v4085_v18  ;;  %v1612_v18 = vrot.slane %v1599_v17, %v4036_v47  ;;  %v1604_v47 = vrot.slane %v1599_v17, %v4025_v35  ;;  %v3734_v35 = vld [vmem:[#allocation10 + $0x88] sm:$0xff]  }
 0x32d   :  { %v3164_v12 = vpop.f32.mrb[12].mxu1 }
 0x32e   :  { %v3165_v13 = vpop.f32.mrb[13].mxu1 }
 0x32f   :  { %v3166_v53 = vadd.f32 %v3165_v13, %v3164_v12  ;;  %v3167_v14 = vpop.f32.mrb[14].mxu1 }
 0x330   :  { %v3168_v15 = vpop.f32.mrb[15].mxu1 }
 0x331   :  { %v3169_v16 = vadd.f32 %v3168_v15, %v3167_v14  ;;  %v2420_v21 = vadd.f32 %v3166_v53, %v1612_v18 }
 0x333   :  { %v2423_v26 = vadd.f32 %v3169_v16, %v1612_v18 }
 0x34d   :  { %v3186_v19 = vpop.f32.mrb[16].mxu1 }
 0x34e   :  { %v3187_v20 = vpop.f32.mrb[17].mxu1 }
 0x34f   :  { %v3188_v23 = vadd.f32 %v3187_v20, %v3186_v19  ;;  %v3189_v24 = vpop.f32.mrb[18].mxu1 }
 0x350   :  { %v3190_v25 = vpop.f32.mrb[19].mxu1 }
 0x351   :  { %v3191_v27 = vadd.f32 %v3190_v25, %v3189_v24  ;;  %v2461_v28 = vadd.f32 %v3188_v23, %v2420_v21 }
 0x353   :  { %v2464_v29 = vadd.f32 %v3191_v27, %v2423_v26 }
 0x36d   :  { %v2501_v30 = vpop.f32.mrb[20].mxu1 }
 0x36e   :  { %v2502_v31 = vadd.f32 %v2501_v30, %v2461_v28  ;;  %v3290_v32 = vpop.f32.mrb[21].mxu1 }
 0x36f   :  { %v2504_v33 = vpop.f32.mrb[22].mxu1 }
 0x370   :  { %v2505_v36 = vadd.f32 %v2504_v33, %v2464_v29  ;;  %v3291_v38 = vpop.f32.mrb[23].mxu1  ;;  %v2510_v39 = vmax.f32 %v2502_v31, 0.0 }
 0x372   :  { %v2513_v40 = vmax.f32 %v2505_v36, 0.0 }
 0x374   :  { %v2516_v41 = vpack.c.bf16 %v2513_v40, %v2510_v39 }
 0x38d   :  { %v2376_v43 = vpop.f32.mrb[12].mxu0 }
 0x38e   :  { %v3320_v44 = vadd.f32 %v2376_v43, %v1604_v47  ;;  %v2378_v45 = vpop.f32.mrb[13].mxu0 }
 0x38f   :  { %v3321_v46 = vadd.f32 %v2378_v45, %v1608_v42  ;;  %v2380_v48 = vpop.f32.mrb[14].mxu0 }
 0x390   :  { %v3322_v49 = vadd.f32 %v2380_v48, %v1604_v47  ;;  %v2382_v50 = vpop.f32.mrb[15].mxu0  ;;  %v2508_v52 = vmax.f32 %v3320_v44, 0.0 }
 0x391   :  { %v3323_v51 = vadd.f32 %v2382_v50, %v1608_v42  ;;  %v2509_v22 = vmax.f32 %v3321_v46, 0.0 }
 0x392   :  { %v2511_v55 = vmax.f32 %v3322_v49, 0.0 }
 0x393   :  { %v2512_v56 = vmax.f32 %v3323_v51, 0.0 }
 0x394   :  { %v2514_v57 = vpack.c.bf16 %v2511_v55, %v2508_v52 }
 0x395   :  { %v2515_v1 = vpack.c.bf16 %v2512_v56, %v2509_v22 }
 0x397   :  { %2748 = vmatprep.mubr.bf16.mxu1 %v2515_v1 }
 0x398   :  { %2749 = vmatmul.mubr.bf16.vlgmr.msra.gmra.mrb[24].mxu1 %v2514_v57 }
 0x399   :  { %3293 = vmatpush3.bf16.msra.mxu1 %v3733_v58  ;;  %3308 = vmatprep.mubr.msk.bf16.mxu1 %vm3896_vm0, %v3894_v0 }
 0x39a   :  { %3294 = vmatprep.subr.bf16.mxu1 %v3894_v0 }
 0x39d   :  { %3295 = vmatpush3.bf16.msra.mxu1 %v3734_v35 }
 0x39e   :  { %3296 = vmatprep.subr.bf16.mxu1 %v3894_v0 }
 0x3a1   :  { %3297 = vmatpush3.bf16.msra.mxu1 %v3735_v37 }
 0x3a2   :  { %3298 = vmatprep.subr.bf16.mxu1 %v3894_v0 }
 0x3a5   :  { %3299 = vmatpush3.bf16.msra.mxu1 %v3736_v59 }
 0x3a6   :  { %3300 = vmatprep.subr.bf16.mxu1 %v3894_v0 }
 0x3a9   :  { %3301 = vmatpush3.bf16.msra.mxu1 %v3737_v60 }
 0x3aa   :  { %3302 = vmatprep.subr.bf16.mxu1 %v3894_v0 }
 0x3ad   :  { %3303 = vmatpush3.bf16.msra.mxu1 %v3738_v61 }
 0x3ae   :  { %3304 = vmatprep.subr.bf16.mxu1 %v3894_v0 }
 0x3b1   :  { %3305 = vmatpush3.bf16.msra.mxu1 %v3739_v62 }
 0x3b2   :  { %3306 = vmatprep.subr.bf16.mxu1 %v3894_v0 }
 0x3b5   :  { %3307 = vmatpush3.bf16.msra.mxu1 %v3740_v63 }
 0x3b8   :  { %3309 = vmatmul.mubr.bf16.vlgmr.msra.gmra.mrb[28].mxu1 %v2516_v41 }
 0x46b   :  { %v3217_v2 = vpop.f32.mrb[24].mxu1 }
 0x46c   :  { %v3218_v3 = vpop.f32.mrb[25].mxu1 }
 0x46d   :  { %v3219_v34 = vadd.f32 %v3218_v3, %v3217_v2  ;;  %v3220_v4 = vpop.f32.mrb[26].mxu1 }
 0x46e   :  { %v3221_v5 = vpop.f32.mrb[27].mxu1 }
 0x46f   :  { %v3222_v6 = vadd.f32 %v3221_v5, %v3220_v4  ;;  %v2751_v8 = vadd.f32 %v3219_v34, %v3083_v7 }
 0x471   :  { %v2754_v11 = vadd.f32 %v3222_v6, %v3083_v7 }
 0x48b   :  { %v2791_v9 = vpop.f32.mrb[28].mxu1 }
 0x48c   :  { %v2792_v54 = vadd.f32 %v2791_v9, %v2751_v8  ;;  %v3310_v10 = vpop.f32.mrb[29].mxu1 }
 0x48d   :  { %v2794_v0 = vpop.f32.mrb[30].mxu1 }
 0x48e   :  { %2798 = vst [vmem:[#allocation11] sm:$0xff] %v2792_v54  ;;  %v2795_v12 = vadd.f32 %v2794_v0, %v2754_v11  ;;  %v3311_v13 = vpop.f32.mrb[31].mxu1 }
 0x490   :  { %2799 = vst [vmem:[#allocation11 + $0x8] sm:$0xff] %v2795_v12 }
 0x491   :  { %3862 = shalt.err (!%p3859_p2)
}
 0x492   :  { %s3863_s16 = scalar_lea.hbm %s4143_s9, 256 }
 0x493   :  { %p3864_p3 = scmp.ne.s32.totalorder %s4143_s9, %s3863_s16  ;;  %p3867_p4 = scmp.lt.u32.totalorder %s3863_s16, %s4143_s9 }
 0x495   :  { %p3869_p5 = pnand %p3867_p4, %p3864_p3 }
 0x497   :  { %3872 = shalt.err (!%p3869_p5)
}
 0x498   :  { %2811 = dma.vmem_to_hbm [thread:$0]  %s2806_s0, 256, %s4143_s9, [#allocation4], %s3886_s5, %s3886_s5, %s3887_s19  }
 0x499   :  { %3879 = dma.done.wait [#allocation4], 256  }
 0x49a   :  { %3880 = vsyncadd [#allocation4], 4294967040 }
 0x49b   :  { %2815 = vsyncpa [#allocation3], 1 }
 0x49c   :  { %2816 = vsyncpa [#allocation6], 1 }
 0x49d   :  { %2817 = vsyncpa [#allocation9], 1 }
 0x49e   :  { %2818 = vsyncpa [#allocation4], 1 }

</bundles_post_ra>
